<compile_context>
chip_gen: v7x
topology: tpu7x:2x2x1
jax: 0.10.0
libtpu: 0.0.40
codegen_flags: <defaults>
</compile_context>

<pallas_src>
import functools
import math

import jax
import jax.numpy as jnp
from jax.experimental import pallas as pl
from jax.experimental.pallas import tpu as pltpu


def _round_up(x, m):
    return (x + m - 1) // m * m


# ----------------------------------------------------------------------------
# Pallas kernel: depthwise lookahead conv over one (tm, lane) tile.
# ----------------------------------------------------------------------------
def _lookahead_kernel(*refs, context, tm, halo_tm, seq_len):
    # refs = (w_ref, xc_ref, xh_ref, o_ref)        if context > 1
    #        (w_ref, xc_ref, o_ref)                if context == 1
    # w_ref:  (context, lane)  f32 per-lane tap weights (lane = fused N*H block)
    # xc_ref: (tm, lane)       current time tile, x.dtype
    # xh_ref: (halo_tm, lane)  lookahead halo rows (context-1 of them used)
    # o_ref:  (tm, lane)       output tile, x.dtype
    if context > 1:
        w_ref, xc_ref, xh_ref, o_ref = refs
    else:
        w_ref, xc_ref, o_ref = refs
        xh_ref = None

    i = pl.program_id(1)          # time-tile index (innermost grid axis)
    wf = w_ref[...]               # already f32; resident across the time sweep

    xc = xc_ref[...].astype(jnp.float32)
    if seq_len % tm != 0:
        # Last (partial) time tile: zero rows at global time >= T so they cannot
        # pollute valid output rows t in [T-context+1, T).
        row = jax.lax.broadcasted_iota(jnp.int32, (tm, 1), 0)
        xc = jnp.where(i * tm + row < seq_len, xc, 0.0)

    # Tap 0 initializes the accumulator in vregs; taps accumulate in vregs and a
    # single store writes o_ref (no read-modify-write of the output ref).
    acc = xc * wf[0:1, :]

    if context > 1:
        hrow = jax.lax.broadcasted_iota(jnp.int32, (halo_tm, 1), 0)
        xh = xh_ref[...].astype(jnp.float32)
        # Zero halo rows past T: realizes F.pad(..., value=0) and also covers the
        # clamped halo block of the last tile (all its rows are masked).
        xh = jnp.where((i + 1) * tm + hrow < seq_len, xh, 0.0)
        xfull = jnp.concatenate([xc, xh], axis=0)        # (tm + halo_tm, lane)
        for c in range(1, context):                      # small static unroll
            acc = acc + xfull[c:c + tm, :] * wf[c:c + 1, :]

    o_ref[...] = acc.astype(o_ref.dtype)


# ----------------------------------------------------------------------------
# Wrapper: layout-free plumbing + pallas_call.
# ----------------------------------------------------------------------------
def lookahead(x, weight, *, block_t=512, block_lane=1024):
    """Lookahead depthwise conv.

    x:      (T, N, H)     sequence, batch, feature (as in the PyTorch module)
    weight: (H, context)  == torch Lookahead.conv.weight[:, 0, :]
    returns (T, N, H) in x.dtype (f32 math, no quantization of x or weight)
    """
    T, N, H = x.shape
    Hw, context = weight.shape
    assert Hw == H and context >= 1
    out_dtype = x.dtype
    NH = N * H

    # Lane blocking over the fused N*H axis (no lane padding; partial lane / time
    # blocks are handled by masked tail stores + the in-kernel time mask).
    if NH <= max(block_lane, 128):
        lane = NH                       # full dim -> no 128-divisibility needed
    else:
        lane = _round_up(block_lane, 128)
    n_lane = pl.cdiv(NH, lane)

    # Time blocking; the halo tile is round_up(context-1, 8) rows and must divide tm.
    halo = context - 1
    halo_tm = _round_up(halo, 8) if halo > 0 else 0
    tm = min(block_t, _round_up(T, 8))
    if halo > 0:
        tm = _round_up(max(tm, halo_tm), halo_tm)
    else:
        tm = _round_up(tm, 8)
    n_t = pl.cdiv(T, tm)

    # (T, N, H) -> (T, N*H): metadata-only reshape, no HBM pass.
    x2 = x.reshape(T, NH)
    # Per-lane taps: (H, context) -> (context, N*H) f32 (tiny vs. x).
    w2 = jnp.tile(weight.astype(jnp.float32).T, (1, N))

    kernel = functools.partial(_lookahead_kernel, context=context, tm=tm,
                               halo_tm=halo_tm, seq_len=T)

    in_specs = [
        pl.BlockSpec((context, lane), lambda j, i: (0, j)),   # taps (lane-resident)
        pl.BlockSpec((tm, lane), lambda j, i: (i, j)),        # current time tile
    ]
    operands = [w2, x2]
    if halo > 0:
        ratio = tm // halo_tm
        last_hb = pl.cdiv(T, halo_tm) - 1
        # Halo = the halo_tm rows starting at (i+1)*tm, clamped in range; rows at
        # global time >= T are zeroed inside the kernel.
        in_specs.append(
            pl.BlockSpec((halo_tm, lane),
                         lambda j, i: (jnp.minimum((i + 1) * ratio, last_hb), j)))
        operands.append(x2)

    out = pl.pallas_call(
        kernel,
        out_shape=jax.ShapeDtypeStruct((T, NH), out_dtype),
        grid=(n_lane, n_t),
        in_specs=in_specs,
        out_specs=pl.BlockSpec((tm, lane), lambda j, i: (i, j)),
        compiler_params=pltpu.CompilerParams(
            dimension_semantics=("parallel", "parallel"),
            vmem_limit_bytes=32 * 1024 * 1024),
    )(*operands)

    # (T, N*H) -> (T, N, H): metadata-only reshape.
    return out.reshape(T, N, H)


# ----------------------------------------------------------------------------
# Pure-JAX reference (mirrors the PyTorch module exactly, in f32).
# ----------------------------------------------------------------------------
def lookahead_ref(x, weight):
    T, N, H = x.shape
    C = weight.shape[1]
    xp = jnp.pad(x.astype(jnp.float32), ((0, C - 1), (0, 0), (0, 0)))
    out = jnp.zeros((T, N, H), jnp.float32)
    for c in range(C):
        out = out + xp[c:c + T] * weight[:, c].astype(jnp.float32)[None, None, :]
    return out


if __name__ == "__main__":
    key = jax.random.PRNGKey(0)

    def run_case(T, N, H, context, block_t, block_lane, k):
        kx, kw = jax.random.split(k)
        x = jax.random.normal(kx, (T, N, H), jnp.float32)
        bound = 1.0 / math.sqrt(context)   # PyTorch Conv1d default init, fan_in = context
        w = jax.random.uniform(kw, (H, context), jnp.float32, -bound, bound)

        fn = jax.jit(functools.partial(lookahead, block_t=block_t,
                                       block_lane=block_lane))
        y = fn(x, w)
        jax.block_until_ready(y)

        y_ref = lookahead_ref(x, w)
        assert y.shape == (T, N, H), y.shape
        assert bool(jnp.all(jnp.isfinite(y)))
        err = float(jnp.max(jnp.abs(y.astype(jnp.float32) - y_ref)))
        assert err < 1e-4, f"case T={T} N={N} H={H} C={context}: max abs err {err}"

    k0, k1, k2 = jax.random.split(key, 3)
    # Single time tile; halo block clamped + fully masked (right zero-padding).
    run_case(32, 4, 160, 7, 512, 1024, k0)
    # Multiple time tiles, partial last tile (T % tm != 0), real halo traffic.
    run_case(37, 3, 96, 3, 16, 1024, k1)
    # context == 1: halo operand dropped entirely.
    run_case(10, 2, 32, 1, 512, 1024, k2)

    print("KERNEL_OK")
</pallas_src>

<mosaic_0001>
module attributes {stable_mosaic.version = 11 : i64} {
  func.func @_lookahead_kernel(%arg0: i32, %arg1: i32, %arg2: memref<7x640xf32, #tpu.memory_space<vmem>>, %arg3: memref<32x640xf32, #tpu.memory_space<vmem>>, %arg4: memref<8x640xf32, #tpu.memory_space<vmem>>, %arg5: memref<32x640xf32, #tpu.memory_space<vmem>>) attributes {dimension_semantics = [#tpu.dimension_semantics<parallel>, #tpu.dimension_semantics<parallel>], iteration_bounds = array<i64: 1, 1>, scalar_prefetch = 0 : i64, scratch_operands = 0 : i64, tpu.core_type = #tpu.core_type<tc>, window_params = [{transform_indices = @transform_0, window_bounds = array<i64: 7, 640>}, {transform_indices = @transform_1, window_bounds = array<i64: 32, 640>}, {transform_indices = @transform_2, window_bounds = array<i64: 8, 640>}, {transform_indices = @transform_3, window_bounds = array<i64: 32, 640>}]} {
    %c0 = arith.constant 0 : index
    %c0_0 = arith.constant 0 : index
    %0 = vector.load %arg2[%c0, %c0_0] : memref<7x640xf32, #tpu.memory_space<vmem>>, vector<7x640xf32>
    %c0_1 = arith.constant 0 : index
    %c0_2 = arith.constant 0 : index
    %1 = vector.load %arg3[%c0_1, %c0_2] : memref<32x640xf32, #tpu.memory_space<vmem>>, vector<32x640xf32>
    %2 = vector.extract_strided_slice %0 {offsets = [0, 0], sizes = [1, 640], strides = [1, 1]} : vector<7x640xf32> to vector<1x640xf32>
    %3 = vector.broadcast %2 : vector<1x640xf32> to vector<32x640xf32>
    %4 = arith.mulf %1, %3 : vector<32x640xf32>
    %5 = tpu.iota {dimensions = array<i32: 0>} : vector<8x1xi32>
    %c0_3 = arith.constant 0 : index
    %c0_4 = arith.constant 0 : index
    %6 = vector.load %arg4[%c0_3, %c0_4] : memref<8x640xf32, #tpu.memory_space<vmem>>, vector<8x640xf32>
    %c1_i32 = arith.constant 1 : i32
    %7 = arith.addi %arg1, %c1_i32 : i32
    %c32_i32 = arith.constant 32 : i32
    %8 = arith.muli %7, %c32_i32 : i32
    %9 = vector.broadcast %8 : i32 to vector<8x1xi32>
    %10 = arith.addi %9, %5 : vector<8x1xi32>
    %c32_i32_5 = arith.constant 32 : i32
    %11 = vector.broadcast %c32_i32_5 : i32 to vector<8x1xi32>
    %12 = arith.cmpi slt, %10, %11 : vector<8x1xi32>
    %cst = arith.constant 0.000000e+00 : f32
    %13 = vector.shape_cast %12 : vector<8x1xi1> to vector<8x1xi1>
    %14 = vector.broadcast %13 : vector<8x1xi1> to vector<8x640xi1>
    %15 = vector.broadcast %cst : f32 to vector<8x640xf32>
    %16 = arith.select %14, %6, %15 : vector<8x640xi1>, vector<8x640xf32>
    %17 = tpu.concatenate %1, %16 in 0 : vector<32x640xf32>, vector<8x640xf32> -> vector<40x640xf32>
    %18 = vector.extract_strided_slice %17 {offsets = [1, 0], sizes = [32, 640], strides = [1, 1]} : vector<40x640xf32> to vector<32x640xf32>
    %19 = vector.extract_strided_slice %0 {offsets = [1, 0], sizes = [1, 640], strides = [1, 1]} : vector<7x640xf32> to vector<1x640xf32>
    %20 = vector.broadcast %19 : vector<1x640xf32> to vector<32x640xf32>
    %21 = arith.mulf %18, %20 : vector<32x640xf32>
    %22 = arith.addf %4, %21 : vector<32x640xf32>
    %23 = vector.extract_strided_slice %17 {offsets = [2, 0], sizes = [32, 640], strides = [1, 1]} : vector<40x640xf32> to vector<32x640xf32>
    %24 = vector.extract_strided_slice %0 {offsets = [2, 0], sizes = [1, 640], strides = [1, 1]} : vector<7x640xf32> to vector<1x640xf32>
    %25 = vector.broadcast %24 : vector<1x640xf32> to vector<32x640xf32>
    %26 = arith.mulf %23, %25 : vector<32x640xf32>
    %27 = arith.addf %22, %26 : vector<32x640xf32>
    %28 = vector.extract_strided_slice %17 {offsets = [3, 0], sizes = [32, 640], strides = [1, 1]} : vector<40x640xf32> to vector<32x640xf32>
    %29 = vector.extract_strided_slice %0 {offsets = [3, 0], sizes = [1, 640], strides = [1, 1]} : vector<7x640xf32> to vector<1x640xf32>
    %30 = vector.broadcast %29 : vector<1x640xf32> to vector<32x640xf32>
    %31 = arith.mulf %28, %30 : vector<32x640xf32>
    %32 = arith.addf %27, %31 : vector<32x640xf32>
    %33 = vector.extract_strided_slice %17 {offsets = [4, 0], sizes = [32, 640], strides = [1, 1]} : vector<40x640xf32> to vector<32x640xf32>
    %34 = vector.extract_strided_slice %0 {offsets = [4, 0], sizes = [1, 640], strides = [1, 1]} : vector<7x640xf32> to vector<1x640xf32>
    %35 = vector.broadcast %34 : vector<1x640xf32> to vector<32x640xf32>
    %36 = arith.mulf %33, %35 : vector<32x640xf32>
    %37 = arith.addf %32, %36 : vector<32x640xf32>
    %38 = vector.extract_strided_slice %17 {offsets = [5, 0], sizes = [32, 640], strides = [1, 1]} : vector<40x640xf32> to vector<32x640xf32>
    %39 = vector.extract_strided_slice %0 {offsets = [5, 0], sizes = [1, 640], strides = [1, 1]} : vector<7x640xf32> to vector<1x640xf32>
    %40 = vector.broadcast %39 : vector<1x640xf32> to vector<32x640xf32>
    %41 = arith.mulf %38, %40 : vector<32x640xf32>
    %42 = arith.addf %37, %41 : vector<32x640xf32>
    %43 = vector.extract_strided_slice %17 {offsets = [6, 0], sizes = [32, 640], strides = [1, 1]} : vector<40x640xf32> to vector<32x640xf32>
    %44 = vector.extract_strided_slice %0 {offsets = [6, 0], sizes = [1, 640], strides = [1, 1]} : vector<7x640xf32> to vector<1x640xf32>
    %45 = vector.broadcast %44 : vector<1x640xf32> to vector<32x640xf32>
    %46 = arith.mulf %43, %45 : vector<32x640xf32>
    %47 = arith.addf %42, %46 : vector<32x640xf32>
    %c0_6 = arith.constant 0 : index
    %c0_7 = arith.constant 0 : index
    %48 = vector.load %arg5[%c0_6, %c0_7] : memref<32x640xf32, #tpu.memory_space<vmem>>, vector<32x640xf32>
    tpu.vector_store %arg5[%c0_6, %c0_7], %47 {strides = array<i32>} : memref<32x640xf32, #tpu.memory_space<vmem>>, vector<32x640xf32>,
    return
  }
  func.func @transform_0(%arg0: i32, %arg1: i32) -> (i32, i32) {
    %c0_i32 = arith.constant 0 : i32
    %c0_i32_0 = arith.constant 0 : i32
    return %c0_i32, %arg0 : i32, i32
  }
  func.func @transform_1(%arg0: i32, %arg1: i32) -> (i32, i32) {
    %c0_i32 = arith.constant 0 : i32
    return %arg1, %arg0 : i32, i32
  }
  func.func @transform_2(%arg0: i32, %arg1: i32) -> (i32, i32) {
    %c1_i32 = arith.constant 1 : i32
    %0 = arith.addi %arg1, %c1_i32 : i32
    %c4_i32 = arith.constant 4 : i32
    %1 = arith.muli %0, %c4_i32 : i32
    %c3_i32 = arith.constant 3 : i32
    %2 = arith.minsi %1, %c3_i32 : i32
    %c0_i32 = arith.constant 0 : i32
    return %2, %arg0 : i32, i32
  }
  func.func @transform_3(%arg0: i32, %arg1: i32) -> (i32, i32) {
    %c0_i32 = arith.constant 0 : i32
    return %arg1, %arg0 : i32, i32
  }
}

</mosaic_0001>

<bundles_post_ra>
// kernel: tile.9
= control target key start
LH: loop header
LB: loop body
LE: loop exit
PB: predicated region body
PF: predicated region fallthrough
CT: control target
= control target key end

     0   :  { %s372_s18 = smov 3  ;;  %s377_s21 = smov 12  ;;  %vm76_vm0 = vcmask 1043458   ;;  %vm81_vm1 = vcmask 1045508   ;;  %vm85_vm2 = vcmask 1046534   ;;  %vm87_vm3 = vcmask 261120   ;;  %s493_s0 = inlined_call_operand.vmem [shape: f32[7,4,160], index: 0, kind: input, shape index: {}]   ;;  %s494_s1 = inlined_call_operand.vmem [shape: f32[7,640], index: 1, kind: output, shape index: {}]  }
   0x1   :  { %v315_v0 = vld [vmem:[%s493_s0 + $0x30] sm:$0xf]  ;;  %v317_v1 = vld [vmem:[%s493_s0 + $0x28] sm:$0xf]  ;;  %v319_v2 = vld [vmem:[%s493_s0 + $0x20] sm:$0xf] }
   0x2   :  { %13 = vst [vmem:[#allocation0 + $0x60] sm:$0xf] %v315_v0  ;;  %23 = vst [vmem:[#allocation0 + $0x50] sm:$0xf] %v317_v1  ;;  %v321_v3 = vld [vmem:[%s493_s0 + $0x18] sm:$0xf] }
   0x3   :  { %33 = vst [vmem:[#allocation0 + $0x40] sm:$0xf] %v319_v2  ;;  %v323_v4 = vld [vmem:[%s493_s0 + $0x10] sm:$0xf]  ;;  %v325_v5 = vld [vmem:[%s493_s0 + $0x8] sm:$0xf] }
   0x4   :  { %43 = vst [vmem:[#allocation0 + $0x30] sm:$0xf] %v321_v3  ;;  %53 = vst [vmem:[#allocation0 + $0x20] sm:$0xf] %v323_v4  ;;  %v68_v6 = vld [vmem:[%s493_s0] sm:$0xf] }
   0x5   :  { %63 = vst [vmem:[#allocation0 + $0x10] sm:$0xf] %v325_v5  ;;  %s379_s22 = smov 48  ;;  %69 = vst [vmem:[#allocation0] sm:$0xf] %v68_v6  ;;  %s384_s25 = smov 3 }
   0x6   :  { %v314_v7 = vld [vmem:[%s493_s0 + $0x34] sm:$0xf]  ;;  %s386_s26 = smov 12  ;;  %v316_v8 = vld [vmem:[%s493_s0 + $0x2c] sm:$0xf]  ;;  %s394_s2 = smov 48 }
   0x7   :  { %8 = vst [vmem:[#allocation0 + $0x68] sm:$0xf] %v314_v7  ;;  %v318_v9 = vld [vmem:[%s493_s0 + $0x24] sm:$0xf]  ;;  %18 = vst [vmem:[#allocation0 + $0x58] sm:$0xf] %v316_v8 }
   0x8   :  { %28 = vst [vmem:[#allocation0 + $0x48] sm:$0xf] %v318_v9  ;;  %v320_v10 = vld [vmem:[%s493_s0 + $0x1c] sm:$0xf]  ;;  %v322_v11 = vld [vmem:[%s493_s0 + $0x14] sm:$0xf] }
   0x9   :  { %s215_s7 = smov 3  ;;  %s218_s8 = smov 12  ;;  %38 = vst [vmem:[#allocation0 + $0x38] sm:$0xf] %v320_v10  ;;  %48 = vst [vmem:[#allocation0 + $0x28] sm:$0xf] %v322_v11 }
   0xa   :  { %v324_v12 = vld [vmem:[%s493_s0 + $0xc] sm:$0xf]  ;;  %v326_v13 = vld [vmem:[%s493_s0 + $0x4] sm:$0xf]  ;;  %s223_s0 = smov 48  ;;  %s106_s13 = smov 3 }
   0xb   :  { %58 = vst [vmem:[#allocation0 + $0x18] sm:$0xf] %v324_v12  ;;  %67 = vst [vmem:[#allocation0 + $0x8] sm:$0xf] %v326_v13  ;;  %v228_v14 = vld [vmem:[#allocation0 + $0x5c] sm:$0x40]  }
   0xc   :  { %s109_s14 = smov 12  ;;  %s114_s15 = smov 48  ;;  %v154_v15 = vld [vmem:[#allocation0 + $0x13] ss:$16 sm:%s372_s18]   ;;  %v101_v18 = vld [vmem:[#allocation0 + $0x5a] sm:$0x40]  }
   0xd   :  { %v157_v16 = vld [vmem:[#allocation0 + $0x13] ss:$16 sm:%s377_s21]   ;;  %v216_v20 = vld [vmem:[#allocation0 + $0x2] ss:$16 sm:%s215_s7]   ;;  %v91_v25 = vld [vmem:[#allocation0] ss:$16 sm:%s384_s25]  }
   0xe   :  { %v162_v17 = vld [vmem:[#allocation0 + $0x13] ss:$16 sm:%s379_s22]   ;;  %v159_v19 = vsel %vm76_vm0, %v157_v16, %v154_v15  ;;  %v219_v21 = vld [vmem:[#allocation0 + $0x2] ss:$16 sm:%s218_s8]   ;;  %v93_v26 = vld [vmem:[#allocation0] ss:$16 sm:%s386_s26]  }
   0xf   :  { %v224_v22 = vld [vmem:[#allocation0 + $0x2] ss:$16 sm:%s223_s0]   ;;  %v164_v23 = vsel %vm81_vm1, %v162_v17, %v159_v19  ;;  %v221_v24 = vsel %vm76_vm0, %v219_v21, %v216_v20  ;;  %v97_v27 = vld [vmem:[#allocation0] ss:$16 sm:%s394_s2]   ;;  %s341_s16 = smov 96   ;;  %v95_v29 = vsel %vm76_vm0, %v93_v26, %v91_v25  ;;  %s123_s17 = smov 3 }
  0x10   :  { %165 = vrot.lane.b32.xlu0 %v164_v23, %s341_s16  ;;  %v226_v28 = vsel %vm81_vm1, %v224_v22, %v221_v24  ;;  %v107_v30 = vld [vmem:[#allocation0 + $0x3] ss:$16 sm:%s106_s13]   ;;  %v99_v34 = vsel %vm81_vm1, %v97_v27, %v95_v29  ;;  %s126_s18 = smov 12  ;;  %vm138_vm4 = vcmask 1047558   ;;  %s342_s19 = smov 64   ;;  %vm204_vm5 = vcmask 523264  }
  0x11   :  { %v110_v31 = vld [vmem:[#allocation0 + $0x3] ss:$16 sm:%s109_s14]   ;;  %v230_v33 = vsel %vm85_vm2, %v228_v14, %v226_v28  ;;  %v103_v37 = vsel %vm85_vm2, %v101_v18, %v99_v34  ;;  %s131_s20 = smov 48  ;;  %s136_s21 = smov 192  ;;  %v184_v41 = vld [vmem:[#allocation0 + $0x5c] sm:$0x40]  }
  0x12   :  { %v115_v32 = vld [vmem:[#allocation0 + $0x3] ss:$16 sm:%s114_s15]   ;;  %v112_v35 = vsel %vm76_vm0, %v110_v31, %v107_v30  ;;  %231 = vrot.lane.b32.xlu1 %v230_v33, %s342_s19  ;;  %v124_v39 = vld [vmem:[#allocation0 + $0xb] ss:$16 sm:%s123_s17]   ;;  %104 = vst [vmem:[%s494_s1] sm:$0x7f] %v103_v37   ;;  %s171_s24 = smov 3 }
  0x13   :  { %v119_v36 = vld [vmem:[#allocation0 + $0x5d] sm:$0x40]   ;;  %v117_v38 = vsel %vm81_vm1, %v115_v32, %v112_v35  ;;  %v127_v40 = vld [vmem:[#allocation0 + $0xb] ss:$16 sm:%s126_s18]   ;;  %s174_s25 = smov 12  ;;  %s179_s26 = smov 48 }
  0x14   :  { %v121_v42 = vsel %vm85_vm2, %v119_v36, %v117_v38  ;;  %v129_v43 = vsel %vm76_vm0, %v127_v40, %v124_v39  ;;  %v132_v44 = vld [vmem:[#allocation0 + $0xb] ss:$16 sm:%s131_s20]   ;;  %v172_v47 = vld [vmem:[#allocation0 + $0x2] ss:$16 sm:%s171_s24]   ;;  %s188_s27 = smov 3  ;;  %s191_s28 = smov 12 }
  0x15   :  { %v137_v45 = vld [vmem:[#allocation0 + $0x2db] ss:$-104 sm:%s136_s21]   ;;  %v134_v46 = vsel %vm81_vm1, %v132_v44, %v129_v43  ;;  %v175_v48 = vld [vmem:[#allocation0 + $0x2] ss:$16 sm:%s174_s25]   ;;  %v189_v52 = vld [vmem:[#allocation0 + $0xa] ss:$16 sm:%s188_s27]  }
  0x16   :  { %v139_v49 = vsel %vm138_vm4, %v137_v45, %v134_v46  ;;  %v177_v50 = vsel %vm76_vm0, %v175_v48, %v172_v47  ;;  %v180_v51 = vld [vmem:[#allocation0 + $0x2] ss:$16 sm:%s179_s26]   ;;  %s196_s29 = smov 48  ;;  %v192_v55 = vld [vmem:[#allocation0 + $0xa] ss:$16 sm:%s191_s28]   ;;  %s237_s30 = smov 3 }
  0x17   :  { %v141_v53 = vsel %vm87_vm3, %v139_v49, %v121_v42  ;;  %v182_v54 = vsel %vm81_vm1, %v180_v51, %v177_v50  ;;  %v197_v56 = vld [vmem:[#allocation0 + $0xa] ss:$16 sm:%s196_s29]   ;;  %v194_v59 = vsel %vm76_vm0, %v192_v55, %v189_v52  ;;  %s240_s2 = smov 12  ;;  %v250_v60 = vld [vmem:[#allocation0 + $0x5b] sm:$0x40]   ;;  %s245_s3 = smov 48 }
  0x18   :  { %v201_v57 = vld [vmem:[#allocation0 + $0x64] sm:$0x40]   ;;  %142 = vrot.lane.b32.xlu0 %v141_v53, %s341_s16  ;;  %v186_v58 = vsel %vm85_vm2, %v184_v41, %v182_v54  ;;  %v199_v61 = vsel %vm81_vm1, %v197_v56, %v194_v59  ;;  %v238_v62 = vld [vmem:[#allocation0 + $0x1] ss:$16 sm:%s237_s30]   ;;  %s254_s4 = smov 3  ;;  %s257_s5 = smov 12 }
  0x19   :  { %v241_v63 = vld [vmem:[#allocation0 + $0x1] ss:$16 sm:%s240_s2]   ;;  %v267_v0 = vld [vmem:[#allocation0 + $0x63] sm:$0x40]   ;;  %v203_v1 = vsel %vm85_vm2, %v201_v57, %v199_v61  ;;  %s262_s6 = smov 48  ;;  %s281_s7 = smov 3 }
  0x1a   :  { %v243_v2 = vsel %vm76_vm0, %v241_v63, %v238_v62  ;;  %v246_v3 = vld [vmem:[#allocation0 + $0x1] ss:$16 sm:%s245_s3]   ;;  %v255_v4 = vld [vmem:[#allocation0 + $0x9] ss:$16 sm:%s254_s4]   ;;  %v205_v5 = vsel %vm204_vm5, %v203_v1, %v186_v58  ;;  %vm144_vm6 = vcmask 785408   ;;  %s284_s8 = smov 12 }
  0x1b   :  { %v248_v6 = vsel %vm81_vm1, %v246_v3, %v243_v2  ;;  %v258_v7 = vld [vmem:[#allocation0 + $0x9] ss:$16 sm:%s257_s5]   ;;  %206 = vrot.lane.b32.xlu1 %v205_v5, %s342_s19  ;;  %v282_v11 = vld [vmem:[#allocation0 + $0x1] ss:$16 sm:%s281_s7]   ;;  %s289_s9 = smov 48  ;;  %s71_s10 = smov 3 }
  0x1c   :  { %v263_v8 = vld [vmem:[#allocation0 + $0x9] ss:$16 sm:%s262_s6]   ;;  %v252_v9 = vsel %vm85_vm2, %v250_v60, %v248_v6  ;;  %v260_v10 = vsel %vm76_vm0, %v258_v7, %v255_v4  ;;  %v285_v13 = vld [vmem:[#allocation0 + $0x1] ss:$16 sm:%s284_s8]   ;;  %s74_s11 = smov 12  ;;  %s79_s12 = smov 48 }
  0x1d   :  { %v265_v12 = vsel %vm81_vm1, %v263_v8, %v260_v10  ;;  %v290_v14 = vld [vmem:[#allocation0 + $0x1] ss:$16 sm:%s289_s9]   ;;  %v287_v17 = vsel %vm76_vm0, %v285_v13, %v282_v11  ;;  %v84_v18 = vld [vmem:[#allocation0 + $0x62] sm:$0x40]   ;;  %s343_s0 = smov 32   ;;  %vm147_vm7 = vcmask 1048320  }
  0x1e   :  { %v294_v15 = vld [vmem:[#allocation0 + $0x5b] sm:$0x40]   ;;  %v269_v16 = vsel %vm85_vm2, %v267_v0, %v265_v12  ;;  %v292_v20 = vsel %vm81_vm1, %v290_v14, %v287_v17  ;;  %v72_v21 = vld [vmem:[#allocation0 + $0x8] ss:$16 sm:%s71_s10]   ;;  %vm233_vm8 = vcmask 1048064   ;;  %vm211_vm9 = vcmask 785920  }
  0x1f   :  { %v271_v19 = vsel %vm144_vm6, %v269_v16, %v252_v9  ;;  %v75_v22 = vld [vmem:[#allocation0 + $0x8] ss:$16 sm:%s74_s11]   ;;  %v296_v23 = vsel %vm85_vm2, %v294_v15, %v292_v20  ;;  %vm277_vm10 = vcmask 523520   ;;  %vm299_vm11 = vcmask 1047808  }
  0x20   :  { %272 = vrot.lane.b32.xlu0 %v271_v19, %s343_s0  ;;  %v77_v24 = vsel %vm76_vm0, %v75_v22, %v72_v21  ;;  %v80_v25 = vld [vmem:[#allocation0 + $0x8] ss:$16 sm:%s79_s12]   ;;  %297 = vrot.lane.b32.xlu1 %v296_v23, %s343_s0 }
  0x21   :  { %v82_v26 = vsel %vm81_vm1, %v80_v25, %v77_v24 }
  0x22   :  { %v86_v27 = vsel %vm85_vm2, %v84_v18, %v82_v26 }
  0x23   :  { %327 = vst.msk [vmem:[%s494_s1 + $0x8] sm:$0x7f] %vm87_vm3, %v86_v27  }
  0x82   :  { %v166_v28 = vpop.permute.xlu0 %165  }
  0x83   :  { %331 = vst.msk [vmem:[%s494_s1 + $0x19] sm:$0x3f] %vm147_vm7, %v166_v28  }
  0x84   :  { %v232_v29 = vpop.permute.xlu1 %231  }
  0x85   :  { %334 = vst.msk [vmem:[%s494_s1 + $0x10] sm:$0x7f] %vm233_vm8, %v232_v29  }
  0x8a   :  { %v143_v30 = vpop.permute.xlu0 %142  }
  0x8b   :  { %328 = vst.msk [vmem:[%s494_s1 + $0x20] sm:$0x7f] %vm144_vm6, %v143_v30  }
  0x8c   :  { %330 = vst.msk [vmem:[%s494_s1 + $0x11] sm:$0x80] %vm147_vm7, %v143_v30   ;;  %329 = vst.msk [vmem:[%s494_s1 + $0x20] sm:$0x7f] %vm147_vm7, %v143_v30  }
  0x8d   :  { %v207_v31 = vpop.permute.xlu1 %206  }
  0x8e   :  { %332 = vst.msk [vmem:[%s494_s1 + $0x18] sm:$0x7f] %vm204_vm5, %v207_v31  }
  0x8f   :  { %333 = vst.msk [vmem:[%s494_s1 + $0x18] sm:$0x7f] %vm211_vm9, %v207_v31  }
  0x92   :  { %v273_v32 = vpop.permute.xlu0 %272   ;;  %v298_v33 = vpop.permute.xlu1 %297  }
  0x93   :  { %335 = vst.msk [vmem:[%s494_s1 + $0x10] sm:$0x7f] %vm87_vm3, %v273_v32  }
  0x94   :  { %336 = vst.msk [vmem:[%s494_s1 + $0x10] sm:$0x7f] %vm277_vm10, %v273_v32  }
  0x95   :  { %337 = vst.msk [vmem:[%s494_s1 + $0x8] sm:$0x7f] %vm299_vm11, %v298_v33  }

// kernel: lookahead.1
= control target key start
LH: loop header
LB: loop body
LE: loop exit
PB: predicated region body
PF: predicated region fallthrough
CT: control target
= control target key end

     0   :  { %v74_v0 = vlaneseq  ;;  %vm203_vm0 = vcmask 1046528   ;;  %vm359_vm1 = vcmask 1045504   ;;  %vm515_vm2 = vcmask 1044480   ;;  %s2442_s0 = inlined_call_operand.vmem [shape: f32[7,640], index: 0, kind: input, shape index: {}]   ;;  %s2443_s2 = inlined_call_operand.vmem [shape: f32[32,640], index: 2, kind: input, shape index: {}, may-alias: {1,2}]   ;;  %s2444_s1 = inlined_call_operand.vmem [shape: f32[32,640], index: 1, kind: input, shape index: {}, may-alias: {1,2}]   ;;  %s2445_s3 = inlined_call_operand.vmem [shape: f32[32,640], index: 3, kind: output, shape index: {}]  }
   0x1   :  { %v49_v2 = vld [vmem:[%s2442_s0] sm:$0x7f]  ;;  %vm671_vm3 = vcmask 1043456   ;;  %v1141_v8 = vld [vmem:[%s2444_s1 + $0x28] sm:$0xff]  ;;  %vm827_vm4 = vcmask 1042432   ;;  %vm983_vm5 = vcmask 1041408  }
   0x2   :  { %v75_v1 = vshrl.u32 %v74_v0, 7  ;;  %v54_v7 = vld [vmem:[%s2444_s1] sm:$0xff]  ;;  %v1164_v16 = vld [vmem:[%s2442_s0 + $0x8] sm:$0x7f]  ;;  %v1233_v50 = vld [vmem:[%s2444_s1 + $0x30] sm:$0xff] }
   0x3   :  { %v55_v49 = vld [vmem:[%s2444_s1 + $0x8] sm:$0xff] }
   0x4   :  { %v1127_v3 = vsub.s32 0, %v75_v1  ;;  %v1129_v4 = vsub.s32 1, %v75_v1  ;;  %v1131_v5 = vsub.s32 2, %v75_v1  ;;  %v1133_v6 = vsub.s32 3, %v75_v1 }
   0x5   :  { %v1143_v9 = vsub.s32 4, %v75_v1  ;;  %v1145_v10 = vsub.s32 5, %v75_v1  ;;  %v1147_v11 = vsub.s32 6, %v75_v1 }
   0x6   :  { %v1150_v12 = vrot.slane %v49_v2, %v1127_v3  ;;  %v1153_v13 = vrot.slane %v49_v2, %v1129_v4  ;;  %v1156_v14 = vrot.slane %v49_v2, %v1131_v5  ;;  %v1159_v15 = vrot.slane %v49_v2, %v1133_v6 }
   0x7   :  { %v1167_v17 = vrot.slane %v49_v2, %v1143_v9  ;;  %v1170_v18 = vrot.slane %v49_v2, %v1145_v10  ;;  %v1173_v19 = vrot.slane %v49_v2, %v1147_v11  ;;  %v1177_v20 = vrot.slane %v1164_v16, %v1127_v3 }
   0x8   :  { %2585 = vst [vmem:[#allocation2_spill] sm:$0xff] %v1150_v12  ;;  %2586 = vst [vmem:[#allocation3_spill] sm:$0xff] %v1153_v13  ;;  %v94_v21 = vmul.f32 %v1150_v12, %v54_v7  ;;  %v153_v22 = vmul.f32 %v1153_v13, %v54_v7  ;;  %v1183_v23 = vmul.f32 %v1153_v13, %v1141_v8 }
   0x9   :  { %2587 = vst [vmem:[#allocation4_spill] sm:$0xff] %v1156_v14  ;;  %2588 = vst [vmem:[#allocation5_spill] sm:$0xff] %v1159_v15  ;;  %v309_v24 = vmul.f32 %v1156_v14, %v54_v7  ;;  %v1188_v25 = vmul.f32 %v1156_v14, %v1141_v8  ;;  %v465_v26 = vmul.f32 %v1159_v15, %v54_v7 }
   0xa   :  { %2589 = vst [vmem:[#allocation6_spill] sm:$0xff] %v1167_v17  ;;  %2590 = vst [vmem:[#allocation7_spill] sm:$0xff] %v1170_v18  ;;  %v1193_v27 = vmul.f32 %v1159_v15, %v1141_v8  ;;  %v621_v28 = vmul.f32 %v1167_v17, %v54_v7  ;;  %v204_v29 = vrot.slane %v153_v22, 1  ;;  %v2459_v30 = vrot.slane %v1183_v23, 1 }
   0xb   :  { %2591 = vst [vmem:[#allocation8_spill] sm:$0xff] %v1173_v19  ;;  %v360_v31 = vrot.slane %v309_v24, 2  ;;  %v1199_v32 = vmul.f32 %v1167_v17, %v1141_v8  ;;  %v2457_v33 = vrot.slane %v1188_v25, 2  ;;  %v516_v34 = vrot.slane %v465_v26, 3 }
   0xc   :  { %v2456_v35 = vrot.slane %v1193_v27, 3  ;;  %v672_v36 = vrot.slane %v621_v28, 4  ;;  %v206_v37 = vsel %vm203_vm0, %v204_v29, %v2459_v30  ;;  %v777_v39 = vmul.f32 %v1170_v18, %v54_v7 }
   0xd   :  { %v2454_v38 = vrot.slane %v1199_v32, 4  ;;  %v1210_v40 = vmul.f32 %v1170_v18, %v1141_v8  ;;  %v269_v41 = vadd.f32 %v206_v37, %v94_v21  ;;  %v362_v42 = vsel %vm359_vm1, %v360_v31, %v2457_v33 }
   0xe   :  { %v518_v43 = vsel %vm515_vm2, %v516_v34, %v2456_v35  ;;  %v933_v44 = vmul.f32 %v1173_v19, %v54_v7  ;;  %v828_v46 = vrot.slane %v777_v39, 5  ;;  %v1225_v48 = vmul.f32 %v1173_v19, %v1141_v8 }
   0xf   :  { %v674_v45 = vsel %vm671_vm3, %v672_v36, %v2454_v38  ;;  %v2453_v47 = vrot.slane %v1210_v40, 5  ;;  %v425_v51 = vadd.f32 %v362_v42, %v269_v41  ;;  %v95_v53 = vmul.f32 %v1177_v20, %v55_v49  ;;  %v52_v38 = vld [vmem:[%s2442_s0 + $0x18] sm:$0x7f] }
  0x10   :  { %v984_v52 = vrot.slane %v933_v44, 6  ;;  %v1238_v54 = vrot.slane %v1164_v16, %v1129_v4  ;;  %v2452_v56 = vrot.slane %v1225_v48, 6  ;;  %v1246_v57 = vrot.slane %v1164_v16, %v1131_v5 }
  0x11   :  { %v830_v55 = vsel %vm827_vm4, %v828_v46, %v2453_v47  ;;  %v1250_v58 = vrot.slane %v1164_v16, %v1133_v6  ;;  %v581_v59 = vadd.f32 %v518_v43, %v425_v51  ;;  %v1259_v62 = vrot.slane %v1164_v16, %v1143_v9 }
  0x12   :  { %v154_v60 = vmul.f32 %v1238_v54, %v55_v49  ;;  %v1255_v61 = vmul.f32 %v1238_v54, %v1233_v50  ;;  %v986_v63 = vsel %vm983_vm5, %v984_v52, %v2452_v56  ;;  %v310_v0 = vmul.f32 %v1246_v57, %v55_v49 }
  0x13   :  { %v1267_v1 = vmul.f32 %v1246_v57, %v1233_v50  ;;  %v466_v2 = vmul.f32 %v1250_v58, %v55_v49  ;;  %v737_v7 = vadd.f32 %v674_v45, %v581_v59  ;;  %v1273_v24 = vmul.f32 %v1250_v58, %v1233_v50  ;;  %v51_v45 = vld [vmem:[%s2442_s0 + $0x10] sm:$0x7f] }
  0x14   :  { %v207_v21 = vrot.slane %v154_v60, 1  ;;  %v2450_v22 = vrot.slane %v1255_v61, 1  ;;  %v363_v26 = vrot.slane %v310_v0, 2  ;;  %v622_v31 = vmul.f32 %v1259_v62, %v55_v49  ;;  %v1314_v0 = vld [vmem:[%s2444_s1 + $0x38] sm:$0xff] }
  0x15   :  { %v2448_v28 = vrot.slane %v1267_v1, 2  ;;  %v519_v29 = vrot.slane %v466_v2, 3  ;;  %v893_v34 = vadd.f32 %v830_v55, %v737_v7  ;;  %v2447_v37 = vrot.slane %v1273_v24, 3 }
  0x16   :  { %v209_v36 = vsel %vm203_vm0, %v207_v21, %v2450_v22  ;;  %v1283_v39 = vmul.f32 %v1259_v62, %v1233_v50  ;;  %v675_v43 = vrot.slane %v622_v31, 4  ;;  %v1290_v44 = vrot.slane %v1164_v16, %v1145_v10 }
  0x17   :  { %v270_v41 = vadd.f32 %v209_v36, %v95_v53  ;;  %v365_v42 = vsel %vm359_vm1, %v363_v26, %v2448_v28  ;;  %v1049_v46 = vadd.f32 %v986_v63, %v893_v34  ;;  %v521_v51 = vsel %vm515_vm2, %v519_v29, %v2447_v37  ;;  %v56_v63 = vld [vmem:[%s2444_s1 + $0x10] sm:$0xff] }
  0x18   :  { %2592 = vst [vmem:[#allocation9_spill] sm:$0xff] %v1290_v44  ;;  %v2446_v52 = vrot.slane %v1283_v39, 4  ;;  %v1301_v53 = vrot.slane %v1164_v16, %v1147_v11  ;;  %v778_v59 = vmul.f32 %v1290_v44, %v55_v49  ;;  %v1306_v60 = vmul.f32 %v1290_v44, %v1233_v50 }
  0x19   :  { %v426_v55 = vadd.f32 %v365_v42, %v270_v41  ;;  %v1317_v2 = vrot.slane %v51_v45, %v1127_v3  ;;  %1069 = vst [vmem:[%s2445_s3] sm:$0xff] %v1049_v46  ;;  %v1331_v26 = vrot.slane %v51_v45, %v1129_v4  ;;  %v1355_v28 = vrot.slane %v51_v45, %v1143_v9 }
  0x1a   :  { %2593 = vst [vmem:[#allocation10_spill] sm:$0xff] %v1301_v53  ;;  %2594 = vst [vmem:[#allocation11_spill] sm:$0xff] %v1306_v60  ;;  %v677_v16 = vsel %vm671_vm3, %v675_v43, %v2446_v52  ;;  %v934_v7 = vmul.f32 %v1301_v53, %v55_v49  ;;  %v1328_v21 = vmul.f32 %v1301_v53, %v1233_v50  ;;  %v831_v31 = vrot.slane %v778_v59, 5 }
  0x1b   :  { %v582_v29 = vadd.f32 %v521_v51, %v426_v55  ;;  %v2449_v34 = vrot.slane %v1306_v60, 5  ;;  %v96_v36 = vmul.f32 %v1317_v2, %v56_v63  ;;  %v155_v43 = vmul.f32 %v1331_v26, %v56_v63 }
  0x1c   :  { %2595 = vst [vmem:[#allocation12_spill] sm:$0xff] %v1328_v21  ;;  %v987_v41 = vrot.slane %v934_v7, 6  ;;  %v2451_v42 = vrot.slane %v1328_v21, 6  ;;  %v1339_v49 = vmul.f32 %v1331_v26, %v1314_v0  ;;  %v1345_v51 = vrot.slane %v51_v45, %v1131_v5 }
  0x1d   :  { %v738_v46 = vadd.f32 %v677_v16, %v582_v29  ;;  %v833_v52 = vsel %vm827_vm4, %v831_v31, %v2449_v34  ;;  %v1348_v55 = vrot.slane %v51_v45, %v1133_v6  ;;  %v210_v7 = vrot.slane %v155_v43, 1 }
  0x1e   :  { %2596 = vst [vmem:[#allocation13_spill] sm:$0xff] %v1339_v49  ;;  %v989_v59 = vsel %vm983_vm5, %v987_v41, %v2451_v42  ;;  %v2455_v37 = vrot.slane %v1339_v49, 1  ;;  %v311_v29 = vmul.f32 %v1345_v51, %v56_v63  ;;  %v1360_v31 = vmul.f32 %v1345_v51, %v1314_v0 }
  0x1f   :  { %v894_v16 = vadd.f32 %v833_v52, %v738_v46  ;;  %v467_v34 = vmul.f32 %v1348_v55, %v56_v63  ;;  %v1368_v41 = vmul.f32 %v1348_v55, %v1314_v0  ;;  %v623_v43 = vmul.f32 %v1355_v28, %v56_v63 }
  0x20   :  { %2597 = vst [vmem:[#allocation14_spill] sm:$0xff] %v1360_v31  ;;  %v212_v22 = vsel %vm203_vm0, %v210_v7, %v2455_v37  ;;  %v1373_v52 = vmul.f32 %v1355_v28, %v1314_v0  ;;  %v366_v56 = vrot.slane %v311_v29, 2  ;;  %v2458_v47 = vrot.slane %v1360_v31, 2 }
  0x21   :  { %2598 = vst [vmem:[#allocation15_spill] sm:$0xff] %v1368_v41  ;;  %v1050_v46 = vadd.f32 %v989_v59, %v894_v16  ;;  %v271_v42 = vadd.f32 %v212_v22, %v96_v36  ;;  %v522_v7 = vrot.slane %v467_v34, 3  ;;  %v2462_v37 = vrot.slane %v1368_v41, 3  ;;  %v57_v34 = vld [vmem:[%s2444_s1 + $0x18] sm:$0xff]  ;;  %v1399_v16 = vld [vmem:[%s2444_s1 + $0x40] sm:$0xff] }
  0x22   :  { %2599 = vst [vmem:[#allocation16_spill] sm:$0xff] %v1373_v52  ;;  %v678_v35 = vrot.slane %v623_v43, 4  ;;  %v2461_v33 = vrot.slane %v1373_v52, 4  ;;  %v368_v22 = vsel %vm359_vm1, %v366_v56, %v2458_v47  ;;  %v1388_v36 = vrot.slane %v51_v45, %v1145_v10 }
  0x23   :  { %1070 = vst [vmem:[%s2445_s3 + $0x8] sm:$0xff] %v1050_v46  ;;  %v1391_v59 = vrot.slane %v51_v45, %v1147_v11  ;;  %v1402_v29 = vrot.slane %v52_v38, %v1127_v3  ;;  %v427_v43 = vadd.f32 %v368_v22, %v271_v42  ;;  %v524_v56 = vsel %vm515_vm2, %v522_v7, %v2462_v37 }
  0x24   :  { %2600 = vst [vmem:[#allocation17_spill] sm:$0xff] %v1388_v36  ;;  %v680_v45 = vsel %vm671_vm3, %v678_v35, %v2461_v33  ;;  %v1411_v46 = vrot.slane %v52_v38, %v1129_v4  ;;  %v779_v47 = vmul.f32 %v1388_v36, %v56_v63  ;;  %v1416_v30 = vmul.f32 %v1388_v36, %v1314_v0 }
  0x25   :  { %2601 = vst [vmem:[#allocation18_spill] sm:$0xff] %v1391_v59  ;;  %2602 = vst [vmem:[#allocation19_spill] sm:$0xff] %v1402_v29  ;;  %v935_v31 = vmul.f32 %v1391_v59, %v56_v63  ;;  %v1421_v42 = vmul.f32 %v1391_v59, %v1314_v0  ;;  %v583_v7 = vadd.f32 %v524_v56, %v427_v43 }
  0x26   :  { %2603 = vst [vmem:[#allocation20_spill] sm:$0xff] %v1411_v46  ;;  %2604 = vst [vmem:[#allocation21_spill] sm:$0xff] %v1416_v30  ;;  %v97_v22 = vmul.f32 %v1402_v29, %v57_v34  ;;  %v156_v35 = vmul.f32 %v1411_v46, %v57_v34  ;;  %v1427_v33 = vmul.f32 %v1411_v46, %v1399_v16  ;;  %v834_v37 = vrot.slane %v779_v47, 5 }
  0x27   :  { %2605 = vst [vmem:[#allocation22_spill] sm:$0xff] %v1421_v42  ;;  %v2470_v52 = vrot.slane %v1416_v30, 5  ;;  %v990_v41 = vrot.slane %v935_v31, 6  ;;  %v2471_v21 = vrot.slane %v1421_v42, 6  ;;  %v739_v63 = vadd.f32 %v680_v45, %v583_v7 }
  0x28   :  { %2606 = vst [vmem:[#allocation23_spill] sm:$0xff] %v1427_v33  ;;  %v213_v49 = vrot.slane %v156_v35, 1  ;;  %v2474_v60 = vrot.slane %v1427_v33, 1  ;;  %v1433_v43 = vrot.slane %v52_v38, %v1131_v5  ;;  %v1442_v46 = vrot.slane %v52_v38, %v1133_v6 }
  0x29   :  { %v836_v56 = vsel %vm827_vm4, %v834_v37, %v2470_v52  ;;  %v992_v47 = vsel %vm983_vm5, %v990_v41, %v2471_v21  ;;  %v1445_v31 = vrot.slane %v52_v38, %v1143_v9 }
  0x2a   :  { %2607 = vst [vmem:[#allocation24_spill] sm:$0xff] %v1433_v43  ;;  %2608 = vst [vmem:[#allocation25_spill] sm:$0xff] %v1442_v46  ;;  %v895_v45 = vadd.f32 %v836_v56, %v739_v63  ;;  %v215_v7 = vsel %vm203_vm0, %v213_v49, %v2474_v60  ;;  %v312_v35 = vmul.f32 %v1433_v43, %v57_v34 }
  0x2b   :  { %2609 = vst [vmem:[#allocation26_spill] sm:$0xff] %v1445_v31  ;;  %v1453_v37 = vmul.f32 %v1433_v43, %v1399_v16  ;;  %v272_v52 = vadd.f32 %v215_v7, %v97_v22  ;;  %v468_v41 = vmul.f32 %v1442_v46, %v57_v34  ;;  %v1458_v21 = vmul.f32 %v1442_v46, %v1399_v16  ;;  %v53_v46 = vld [vmem:[%s2442_s0 + $0x20] sm:$0x7f] }
  0x2c   :  { %v624_v42 = vmul.f32 %v1445_v31, %v57_v34  ;;  %v1051_v63 = vadd.f32 %v992_v47, %v895_v45  ;;  %v369_v56 = vrot.slane %v312_v35, 2  ;;  %v1464_v49 = vmul.f32 %v1445_v31, %v1399_v16 }
  0x2d   :  { %2610 = vst [vmem:[#allocation27_spill] sm:$0xff] %v1453_v37  ;;  %2611 = vst [vmem:[#allocation28_spill] sm:$0xff] %v1458_v21  ;;  %v2483_v33 = vrot.slane %v1453_v37, 2  ;;  %v525_v60 = vrot.slane %v468_v41, 3  ;;  %v2482_v30 = vrot.slane %v1458_v21, 3  ;;  %v1468_v7 = vrot.slane %v52_v38, %v1145_v10 }
  0x2e   :  { %2612 = vst [vmem:[#allocation29_spill] sm:$0xff] %v1464_v49  ;;  %v681_v22 = vrot.slane %v624_v42, 4  ;;  %1071 = vst [vmem:[%s2445_s3 + $0x10] sm:$0xff] %v1051_v63  ;;  %v2486_v45 = vrot.slane %v1464_v49, 4  ;;  %v1481_v35 = vrot.slane %v52_v38, %v1147_v11  ;;  %v1484_v42 = vrot.slane %v53_v46, %v1127_v3 }
  0x2f   :  { %2613 = vst [vmem:[#allocation30_spill] sm:$0xff] %v1468_v7  ;;  %v371_v47 = vsel %vm359_vm1, %v369_v56, %v2483_v33  ;;  %v527_v31 = vsel %vm515_vm2, %v525_v60, %v2482_v30  ;;  %v780_v43 = vmul.f32 %v1468_v7, %v57_v34  ;;  %v1492_v63 = vmul.f32 %v1468_v7, %v1399_v16  ;;  %v58_v56 = vld [vmem:[%s2444_s1 + $0x20] sm:$0xff]  ;;  %v1508_v60 = vld [vmem:[%s2444_s1 + $0x48] sm:$0xff] }
  0x30   :  { %2614 = vst [vmem:[#allocation31_spill] sm:$0xff] %v1481_v35  ;;  %2615 = vst [vmem:[#allocation32_spill] sm:$0xff] %v1484_v42  ;;  %v428_v41 = vadd.f32 %v371_v47, %v272_v52  ;;  %v683_v3 = vsel %vm671_vm3, %v681_v22, %v2486_v45  ;;  %v936_v38 = vmul.f32 %v1481_v35, %v57_v34 }
  0x31   :  { %2616 = vst [vmem:[#allocation33_spill] sm:$0xff] %v1492_v63  ;;  %v1503_v52 = vmul.f32 %v1481_v35, %v1399_v16  ;;  %v98_v47 = vmul.f32 %v1484_v42, %v58_v56  ;;  %v837_v33 = vrot.slane %v780_v43, 5  ;;  %v2490_v21 = vrot.slane %v1492_v63, 5 }
  0x32   :  { %v584_v30 = vadd.f32 %v527_v31, %v428_v41  ;;  %v1513_v49 = vrot.slane %v53_v46, %v1129_v4  ;;  %v993_v22 = vrot.slane %v936_v38, 6  ;;  %v1517_v45 = vrot.slane %v53_v46, %v1131_v5 }
  0x33   :  { %2617 = vst [vmem:[#allocation34_spill] sm:$0xff] %v1503_v52  ;;  %v2493_v34 = vrot.slane %v1503_v52, 6  ;;  %v1520_v37 = vrot.slane %v53_v46, %v1133_v6  ;;  %v839_v31 = vsel %vm827_vm4, %v837_v33, %v2490_v21 }
  0x34   :  { %2618 = vst [vmem:[#allocation35_spill] sm:$0xff] %v1513_v49  ;;  %2619 = vst [vmem:[#allocation36_spill] sm:$0xff] %v1517_v45  ;;  %v740_v35 = vadd.f32 %v683_v3, %v584_v30  ;;  %v157_v43 = vmul.f32 %v1513_v49, %v58_v56  ;;  %v1528_v4 = vmul.f32 %v1513_v49, %v1508_v60 }
  0x35   :  { %2620 = vst [vmem:[#allocation37_spill] sm:$0xff] %v1520_v37  ;;  %v995_v41 = vsel %vm983_vm5, %v993_v22, %v2493_v34  ;;  %v313_v5 = vmul.f32 %v1517_v45, %v58_v56  ;;  %v1536_v6 = vmul.f32 %v1517_v45, %v1508_v60  ;;  %v469_v30 = vmul.f32 %v1520_v37, %v58_v56 }
  0x36   :  { %v896_v3 = vadd.f32 %v839_v31, %v740_v35  ;;  %v216_v33 = vrot.slane %v157_v43, 1  ;;  %v2500_v38 = vrot.slane %v1528_v4, 1  ;;  %v1542_v21 = vmul.f32 %v1520_v37, %v1508_v60 }
  0x37   :  { %v372_v63 = vrot.slane %v313_v5, 2  ;;  %v2499_v52 = vrot.slane %v1536_v6, 2  ;;  %v528_v22 = vrot.slane %v469_v30, 3  ;;  %v1546_v34 = vrot.slane %v53_v46, %v1143_v9 }
  0x38   :  { %v1052_v49 = vadd.f32 %v995_v41, %v896_v3  ;;  %v218_v45 = vsel %vm203_vm0, %v216_v33, %v2500_v38  ;;  %v2498_v35 = vrot.slane %v1542_v21, 3  ;;  %v1553_v31 = vrot.slane %v53_v46, %v1145_v10  ;;  %v1580_v41 = vld [vmem:[%s2444_s1 + $0x50] sm:$0xff] }
  0x39   :  { %2621 = vst [vmem:[#allocation38_spill] sm:$0xff] %v1546_v34  ;;  %v273_v43 = vadd.f32 %v218_v45, %v98_v47  ;;  %v374_v5 = vsel %vm359_vm1, %v372_v63, %v2499_v52  ;;  %v625_v30 = vmul.f32 %v1546_v34, %v58_v56  ;;  %v1561_v9 = vmul.f32 %v1546_v34, %v1508_v60 }
  0x3a   :  { %2622 = vst [vmem:[#allocation39_spill] sm:$0xff] %v1553_v31  ;;  %1072 = vst [vmem:[%s2445_s3 + $0x18] sm:$0xff] %v1052_v49  ;;  %v530_v10 = vsel %vm515_vm2, %v528_v22, %v2498_v35  ;;  %v781_v45 = vmul.f32 %v1553_v31, %v58_v56  ;;  %v1572_v47 = vmul.f32 %v1553_v31, %v1508_v60 }
  0x3b   :  { %v1575_v63 = vrot.slane %v53_v46, %v1147_v11  ;;  %v429_v3 = vadd.f32 %v374_v5, %v273_v43  ;;  %v684_v49 = vrot.slane %v625_v30, 4  ;;  %v2501_v33 = vrot.slane %v1561_v9, 4 }
  0x3c   :  { %2623 = vst [vmem:[#allocation40_spill] sm:$0xff] %v1572_v47  ;;  %v99_v22 = vmul.f32 %v1150_v12, %v1141_v8  ;;  %v840_v35 = vrot.slane %v781_v45, 5  ;;  %v2504_v52 = vrot.slane %v1572_v47, 5  ;;  %v1596_v5 = vmul.f32 %v1153_v13, %v1580_v41 }
  0x3d   :  { %2624 = vst [vmem:[#allocation41_spill] sm:$0xff] %v1575_v63  ;;  %v937_v38 = vmul.f32 %v1575_v63, %v58_v56  ;;  %v1589_v11 = vmul.f32 %v1575_v63, %v1508_v60  ;;  %v585_v46 = vadd.f32 %v530_v10, %v429_v3  ;;  %v686_v43 = vsel %vm671_vm3, %v684_v49, %v2501_v33 }
  0x3e   :  { %v1600_v8 = vmul.f32 %v1156_v14, %v1580_v41  ;;  %v842_v56 = vsel %vm827_vm4, %v840_v35, %v2504_v52  ;;  %v1608_v10 = vmul.f32 %v1159_v15, %v1580_v41  ;;  %v2516_v49 = vrot.slane %v1596_v5, 1 }
  0x3f   :  { %2625 = vst [vmem:[#allocation42_spill] sm:$0xff] %v1589_v11  ;;  %v996_v30 = vrot.slane %v937_v38, 6  ;;  %v2505_v45 = vrot.slane %v1589_v11, 6  ;;  %v741_v3 = vadd.f32 %v686_v43, %v585_v46  ;;  %v1614_v14 = vmul.f32 %v1167_v17, %v1580_v41  ;;  %v1631_v43 = vld [vmem:[%s2444_s1 + $0x58] sm:$0xff] }
  0x40   :  { %v1622_v52 = vmul.f32 %v1170_v18, %v1580_v41  ;;  %v1626_v46 = vmul.f32 %v1173_v19, %v1580_v41  ;;  %v2629_v38 = vrot.slane %v1600_v8, 2  ;;  %v2630_v11 = vrot.slane %v1188_v25, 2 }
  0x41   :  { %v998_v35 = vsel %vm983_vm5, %v996_v30, %v2505_v45  ;;  %v897_v33 = vadd.f32 %v842_v56, %v741_v3  ;;  %v2628_v30 = vrot.slane %v1183_v23, 1  ;;  %v2518_v19 = vrot.slane %v1614_v14, 4 }
  0x42   :  { %2626 = vst [vmem:[#allocation43_spill] sm:$0xff] %v1622_v52  ;;  %2627 = vst [vmem:[#allocation44_spill] sm:$0xff] %v1626_v46  ;;  %v376_v47 = vsel %vm359_vm1, %v2630_v11, %v2629_v38  ;;  %v2517_v17 = vrot.slane %v1622_v52, 5  ;;  %v2631_v56 = vrot.slane %v1608_v10, 3  ;;  %v2632_v3 = vrot.slane %v1193_v27, 3 }
  0x43   :  { %v220_v45 = vsel %vm203_vm0, %v2628_v30, %v2516_v49  ;;  %v1053_v15 = vadd.f32 %v998_v35, %v897_v33  ;;  %v2524_v30 = vrot.slane %v1626_v46, 6  ;;  %v1653_v49 = vmul.f32 %v1238_v54, %v1631_v43 }
  0x44   :  { %v274_v18 = vadd.f32 %v220_v45, %v99_v22  ;;  %v532_v23 = vsel %vm515_vm2, %v2632_v3, %v2631_v56  ;;  %v2633_v22 = vrot.slane %v1199_v32, 4  ;;  %v100_v33 = vmul.f32 %v1177_v20, %v1233_v50  ;;  %v1695_v3 = vld [vmem:[%s2444_s1 + $0x60] sm:$0xff] }
  0x45   :  { %v1664_v27 = vmul.f32 %v1246_v57, %v1631_v43  ;;  %1073 = vst [vmem:[%s2445_s3 + $0x20] sm:$0xff] %v1053_v15  ;;  %v2521_v45 = vrot.slane %v1653_v49, 1  ;;  %v1676_v32 = vmul.f32 %v1259_v62, %v1631_v43  ;;  %v1680_v50 = vmul.f32 %v1290_v44, %v1631_v43 }
  0x46   :  { %v430_v25 = vadd.f32 %v376_v47, %v274_v18  ;;  %v688_v11 = vsel %vm671_vm3, %v2633_v22, %v2518_v19  ;;  %v1672_v18 = vmul.f32 %v1250_v58, %v1631_v43  ;;  %v2635_v35 = vrot.slane %v1210_v40, 5 }
  0x47   :  { %2634 = vst [vmem:[#allocation45_spill] sm:$0xff] %v1680_v50  ;;  %v1690_v56 = vmul.f32 %v1301_v53, %v1631_v43  ;;  %v2638_v40 = vrot.slane %v1255_v61, 1  ;;  %v2639_v52 = vrot.slane %v1664_v27, 2  ;;  %v2640_v46 = vrot.slane %v1267_v1, 2 }
  0x48   :  { %v586_v47 = vadd.f32 %v532_v23, %v430_v25  ;;  %v844_v15 = vsel %vm827_vm4, %v2635_v35, %v2517_v17  ;;  %v2637_v23 = vrot.slane %v1225_v48, 6  ;;  %v2523_v35 = vrot.slane %v1672_v18, 3 }
  0x49   :  { %2636 = vst [vmem:[#allocation46_spill] sm:$0xff] %v1690_v56  ;;  %v222_v22 = vsel %vm203_vm0, %v2638_v40, %v2521_v45  ;;  %v2522_v17 = vrot.slane %v1676_v32, 4  ;;  %v378_v48 = vsel %vm359_vm1, %v2640_v46, %v2639_v52  ;;  %v2641_v61 = vrot.slane %v1273_v24, 3 }
  0x4a   :  { %v1000_v25 = vsel %vm983_vm5, %v2637_v23, %v2524_v30  ;;  %v742_v19 = vadd.f32 %v688_v11, %v586_v47  ;;  %v275_v38 = vadd.f32 %v222_v22, %v100_v33  ;;  %v101_v23 = vmul.f32 %v1317_v2, %v1314_v0  ;;  %v2649_v30 = vld [vmem:[#allocation13_spill] sm:$0xff] }
  0x4b   :  { %v534_v40 = vsel %vm515_vm2, %v2641_v61, %v2523_v35  ;;  %v2528_v45 = vrot.slane %v1680_v50, 5  ;;  %v1725_v33 = vmul.f32 %v1331_v26, %v1695_v3  ;;  %v2643_v0 = vrot.slane %v1283_v39, 4  ;;  %v2657_v50 = vld [vmem:[#allocation15_spill] sm:$0xff] }
  0x4c   :  { %v898_v1 = vadd.f32 %v844_v15, %v742_v19  ;;  %v431_v47 = vadd.f32 %v378_v48, %v275_v38  ;;  %v1734_v24 = vmul.f32 %v1345_v51, %v1695_v3  ;;  %v1739_v22 = vmul.f32 %v1348_v55, %v1695_v3 }
  0x4d   :  { %2642 = vst [vmem:[#allocation47_spill] sm:$0xff] %v1725_v33  ;;  %v690_v52 = vsel %vm671_vm3, %v2643_v0, %v2522_v17  ;;  %v2527_v46 = vrot.slane %v1725_v33, 1  ;;  %v1743_v19 = vmul.f32 %v1355_v28, %v1695_v3  ;;  %v1747_v15 = vmul.f32 %v1388_v36, %v1695_v3  ;;  %v2647_v0 = vld [vmem:[#allocation11_spill] sm:$0xff] }
  0x4e   :  { %2644 = vst [vmem:[#allocation48_spill] sm:$0xff] %v1739_v22  ;;  %v1054_v39 = vadd.f32 %v1000_v25, %v898_v1  ;;  %v587_v38 = vadd.f32 %v534_v40, %v431_v47  ;;  %v2534_v48 = vrot.slane %v1734_v24, 2  ;;  %v1752_v61 = vmul.f32 %v1391_v59, %v1695_v3  ;;  %v1769_v1 = vld [vmem:[%s2444_s1 + $0x68] sm:$0xff] }
  0x4f   :  { %2645 = vst [vmem:[#allocation49_spill] sm:$0xff] %v1743_v19  ;;  %2646 = vst [vmem:[#allocation50_spill] sm:$0xff] %v1747_v15  ;;  %v2648_v17 = vrot.slane %v2647_v0, 5  ;;  %v2650_v11 = vrot.slane %v2649_v30, 1  ;;  %v2651_v47 = vrot.slane %v1690_v56, 6  ;;  %v2652_v0 = vld [vmem:[#allocation12_spill] sm:$0xff] }
  0x50   :  { %1074 = vst [vmem:[%s2445_s3 + $0x28] sm:$0xff] %v1054_v39  ;;  %v2653_v30 = vrot.slane %v2652_v0, 6  ;;  %v2656_v33 = vrot.slane %v1739_v22, 3  ;;  %v2658_v59 = vrot.slane %v2657_v50, 3  ;;  %v2677_v22 = vld [vmem:[#allocation27_spill] sm:$0xff] }
  0x51   :  { %v846_v35 = vsel %vm827_vm4, %v2648_v17, %v2528_v45  ;;  %v224_v36 = vsel %vm203_vm0, %v2650_v11, %v2527_v46  ;;  %v743_v17 = vadd.f32 %v690_v52, %v587_v38  ;;  %v2654_v45 = vld [vmem:[#allocation14_spill] sm:$0xff]  ;;  %v2659_v52 = vrot.slane %v1743_v19, 4  ;;  %v2660_v38 = vld [vmem:[#allocation16_spill] sm:$0xff] }
  0x52   :  { %v1002_v11 = vsel %vm983_vm5, %v2653_v30, %v2651_v47  ;;  %v276_v46 = vadd.f32 %v224_v36, %v101_v23  ;;  %v2655_v40 = vrot.slane %v2654_v45, 2  ;;  %v536_v39 = vsel %vm515_vm2, %v2658_v59, %v2656_v33  ;;  %v2662_v30 = vld [vmem:[#allocation20_spill] sm:$0xff] }
  0x53   :  { %v2661_v56 = vrot.slane %v2660_v38, 4  ;;  %v2538_v36 = vrot.slane %v1747_v15, 5  ;;  %v899_v47 = vadd.f32 %v846_v35, %v743_v17  ;;  %v1800_v50 = vmul.f32 %v2662_v30, %v1769_v1  ;;  %v2664_v59 = vld [vmem:[#allocation24_spill] sm:$0xff]  ;;  %v2665_v38 = vld [vmem:[#allocation25_spill] sm:$0xff]  ;;  %v2668_v17 = vld [vmem:[#allocation31_spill] sm:$0xff] }
  0x54   :  { %v380_v25 = vsel %vm359_vm1, %v2655_v40, %v2534_v48  ;;  %v102_v40 = vmul.f32 %v1402_v29, %v1399_v16  ;;  %v1804_v33 = vmul.f32 %v2664_v59, %v1769_v1  ;;  %v1816_v35 = vmul.f32 %v1468_v7, %v1769_v1 }
  0x55   :  { %v692_v0 = vsel %vm671_vm3, %v2661_v56, %v2659_v52  ;;  %v432_v45 = vadd.f32 %v380_v25, %v276_v46  ;;  %2663 = vst [vmem:[#allocation11_spill] sm:$0xff] %v1800_v50  ;;  %v1808_v56 = vmul.f32 %v2665_v38, %v1769_v1  ;;  %v2666_v52 = vld [vmem:[#allocation26_spill] sm:$0xff]  ;;  %v1055_v16 = vadd.f32 %v1002_v11, %v899_v47  ;;  %v2669_v38 = vld [vmem:[#allocation21_spill] sm:$0xff]  ;;  %v1834_v11 = vld [vmem:[%s2444_s1 + $0x70] sm:$0xff] }
  0x56   :  { %v1812_v48 = vmul.f32 %v2666_v52, %v1769_v1  ;;  %2667 = vst [vmem:[#allocation13_spill] sm:$0xff] %v1816_v35  ;;  %v2542_v25 = vrot.slane %v1800_v50, 1  ;;  %v1821_v23 = vmul.f32 %v2668_v17, %v1769_v1  ;;  %v2670_v59 = vrot.slane %v2669_v38, 5 }
  0x57   :  { %v588_v46 = vadd.f32 %v536_v39, %v432_v45  ;;  %1075 = vst [vmem:[%s2445_s3 + $0x30] sm:$0xff] %v1055_v16  ;;  %v2671_v47 = vrot.slane %v1752_v61, 6  ;;  %v2672_v45 = vld [vmem:[#allocation22_spill] sm:$0xff]  ;;  %v2676_v17 = vrot.slane %v1804_v33, 2  ;;  %v2678_v16 = vrot.slane %v2677_v22, 2 }
  0x58   :  { %v848_v30 = vsel %vm827_vm4, %v2670_v59, %v2538_v36  ;;  %v2673_v59 = vrot.slane %v2672_v45, 6  ;;  %v2674_v36 = vld [vmem:[#allocation23_spill] sm:$0xff] }
  0x59   :  { %v744_v39 = vadd.f32 %v692_v0, %v588_v46  ;;  %v2675_v7 = vrot.slane %v2674_v36, 1  ;;  %v382_v0 = vsel %vm359_vm1, %v2678_v16, %v2676_v17  ;;  %v2680_v36 = vld [vmem:[#allocation28_spill] sm:$0xff]  ;;  %v2685_v17 = vld [vmem:[#allocation35_spill] sm:$0xff] }
  0x5a   :  { %v1004_v38 = vsel %vm983_vm5, %v2673_v59, %v2671_v47  ;;  %v103_v47 = vmul.f32 %v1484_v42, %v1508_v60  ;;  %v2679_v59 = vrot.slane %v1808_v56, 3  ;;  %v2681_v50 = vrot.slane %v2680_v36, 3  ;;  %v2686_v60 = vld [vmem:[#allocation36_spill] sm:$0xff] }
  0x5b   :  { %v226_v19 = vsel %vm203_vm0, %v2675_v7, %v2542_v25  ;;  %v900_v45 = vadd.f32 %v848_v30, %v744_v39  ;;  %v1870_v16 = vmul.f32 %v2685_v17, %v1834_v11  ;;  %v1874_v30 = vmul.f32 %v2686_v60, %v1834_v11 }
  0x5c   :  { %v277_v15 = vadd.f32 %v226_v19, %v102_v40  ;;  %v538_v7 = vsel %vm515_vm2, %v2681_v50, %v2679_v59  ;;  %v2682_v19 = vrot.slane %v1812_v48, 4  ;;  %v2683_v40 = vld [vmem:[#allocation29_spill] sm:$0xff]  ;;  %v1878_v39 = vmul.f32 %v1520_v37, %v1834_v11 }
  0x5d   :  { %v2684_v25 = vrot.slane %v2683_v40, 4  ;;  %v1882_v50 = vmul.f32 %v1546_v34, %v1834_v11  ;;  %v1056_v59 = vadd.f32 %v1004_v38, %v900_v45  ;;  %v1887_v36 = vmul.f32 %v1553_v31, %v1834_v11  ;;  %v1899_v38 = vld [vmem:[%s2444_s1 + $0x78] sm:$0xff]  ;;  %v2692_v40 = vld [vmem:[#allocation34_spill] sm:$0xff] }
  0x5e   :  { %v433_v46 = vadd.f32 %v382_v0, %v277_v15  ;;  %v1891_v15 = vmul.f32 %v1575_v63, %v1834_v11  ;;  %v2688_v45 = vrot.slane %v1816_v35, 5  ;;  %v2694_v31 = vrot.slane %v1870_v16, 1 }
  0x5f   :  { %v694_v22 = vsel %vm671_vm3, %v2684_v25, %v2682_v19  ;;  %2687 = vst [vmem:[#allocation12_spill] sm:$0xff] %v1882_v50  ;;  %1076 = vst [vmem:[%s2445_s3 + $0x38] sm:$0xff] %v1056_v59  ;;  %v2689_v25 = vld [vmem:[#allocation33_spill] sm:$0xff]  ;;  %v2693_v19 = vrot.slane %v2692_v40, 6  ;;  %v2695_v34 = vrot.slane %v1528_v4, 1 }
  0x60   :  { %v589_v0 = vadd.f32 %v538_v7, %v433_v46  ;;  %v2690_v63 = vrot.slane %v2689_v25, 5  ;;  %v2691_v7 = vrot.slane %v1821_v23, 6  ;;  %v2696_v25 = vrot.slane %v1874_v30, 2 }
  0x61   :  { %v228_v37 = vsel %vm203_vm0, %v2695_v34, %v2694_v31  ;;  %v2700_v34 = vrot.slane %v1882_v50, 4  ;;  %v2701_v31 = vrot.slane %v1561_v9, 4  ;;  %v2707_v9 = vrot.slane %v1887_v36, 5 }
  0x62   :  { %v850_v46 = vsel %vm827_vm4, %v2690_v63, %v2688_v45  ;;  %v1006_v52 = vsel %vm983_vm5, %v2693_v19, %v2691_v7  ;;  %v745_v60 = vadd.f32 %v694_v22, %v589_v0  ;;  %v278_v35 = vadd.f32 %v228_v37, %v103_v47 }
  0x63   :  { %v2697_v63 = vrot.slane %v1536_v6, 2  ;;  %v2698_v19 = vrot.slane %v1878_v39, 3  ;;  %v2699_v7 = vrot.slane %v1542_v21, 3  ;;  %v696_v37 = vsel %vm671_vm3, %v2701_v31, %v2700_v34 }
  0x64   :  { %v104_v47 = vmul.f32 %v1150_v12, %v1580_v41  ;;  %v1940_v6 = vmul.f32 %v1153_v13, %v1899_v38  ;;  %v901_v22 = vadd.f32 %v850_v46, %v745_v60  ;;  %v2705_v41 = vld [vmem:[#allocation7_spill] sm:$0xff]  ;;  %v2710_v13 = vrot.slane %v1891_v15, 6 }
  0x65   :  { %v384_v45 = vsel %vm359_vm1, %v2697_v63, %v2696_v25  ;;  %v540_v4 = vsel %vm515_vm2, %v2699_v7, %v2698_v19  ;;  %v2702_v25 = vld [vmem:[#allocation4_spill] sm:$0xff]  ;;  %v2703_v63 = vld [vmem:[#allocation5_spill] sm:$0xff]  ;;  %v2704_v7 = vld [vmem:[#allocation6_spill] sm:$0xff]  ;;  %v1957_v31 = vmul.f32 %v2705_v41, %v1899_v38 }
  0x66   :  { %v434_v0 = vadd.f32 %v384_v45, %v278_v35  ;;  %v1944_v21 = vmul.f32 %v2702_v25, %v1899_v38  ;;  %v1948_v19 = vmul.f32 %v2703_v63, %v1899_v38  ;;  %v1953_v34 = vmul.f32 %v2704_v7, %v1899_v38  ;;  %v2706_v35 = vld [vmem:[#allocation8_spill] sm:$0xff]  ;;  %v2711_v41 = vld [vmem:[#allocation42_spill] sm:$0xff] }
  0x67   :  { %v1961_v60 = vmul.f32 %v2706_v35, %v1899_v38  ;;  %v1057_v46 = vadd.f32 %v1006_v52, %v901_v22  ;;  %v2708_v63 = vld [vmem:[#allocation40_spill] sm:$0xff]  ;;  %v2712_v12 = vrot.slane %v2711_v41, 6  ;;  %v2713_v35 = vrot.slane %v1940_v6, 1 }
  0x68   :  { %v590_v45 = vadd.f32 %v540_v4, %v434_v0  ;;  %v2557_v40 = vrot.slane %v1944_v21, 2  ;;  %v2556_v59 = vrot.slane %v1948_v19, 3  ;;  %v2709_v25 = vrot.slane %v2708_v63, 5  ;;  %v1984_v0 = vld [vmem:[%s2444_s1 + $0x80] sm:$0xff] }
  0x69   :  { %v1008_v50 = vsel %vm983_vm5, %v2712_v12, %v2710_v13  ;;  %v2714_v52 = vrot.slane %v1596_v5, 1  ;;  %v2555_v22 = vrot.slane %v1953_v34, 4  ;;  %1077 = vst [vmem:[%s2445_s3 + $0x40] sm:$0xff] %v1057_v46  ;;  %v2715_v12 = vrot.slane %v1600_v8, 2 }
  0x6a   :  { %v852_v7 = vsel %vm827_vm4, %v2709_v25, %v2707_v9  ;;  %v746_v25 = vadd.f32 %v696_v37, %v590_v45  ;;  %v2565_v5 = vrot.slane %v1957_v31, 5  ;;  %v2716_v9 = vrot.slane %v1608_v10, 3 }
  0x6b   :  { %v230_v4 = vsel %vm203_vm0, %v2714_v52, %v2713_v35  ;;  %v386_v13 = vsel %vm359_vm1, %v2715_v12, %v2557_v40  ;;  %v2717_v35 = vrot.slane %v1614_v14, 4  ;;  %v105_v8 = vmul.f32 %v1177_v20, %v1631_v43 }
  0x6c   :  { %v279_v63 = vadd.f32 %v230_v4, %v104_v47  ;;  %v542_v41 = vsel %vm515_vm2, %v2716_v9, %v2556_v59  ;;  %v2560_v47 = vrot.slane %v1961_v60, 6  ;;  %v902_v46 = vadd.f32 %v852_v7, %v746_v25  ;;  %v2720_v9 = vld [vmem:[#allocation43_spill] sm:$0xff]  ;;  %v2722_v59 = vld [vmem:[#allocation44_spill] sm:$0xff] }
  0x6d   :  { %v698_v37 = vsel %vm671_vm3, %v2717_v35, %v2555_v22  ;;  %v2010_v52 = vmul.f32 %v1238_v54, %v1984_v0  ;;  %v2014_v10 = vmul.f32 %v1246_v57, %v1984_v0  ;;  %v2018_v14 = vmul.f32 %v1250_v58, %v1984_v0 }
  0x6e   :  { %v435_v45 = vadd.f32 %v386_v13, %v279_v63  ;;  %v2022_v4 = vmul.f32 %v1259_v62, %v1984_v0  ;;  %v2026_v43 = vmul.f32 %v1290_v44, %v1984_v0  ;;  %v2030_v7 = vmul.f32 %v1301_v53, %v1984_v0 }
  0x6f   :  { %v1058_v25 = vadd.f32 %v1008_v50, %v902_v46  ;;  %v2564_v12 = vrot.slane %v2010_v52, 1  ;;  %v2563_v13 = vrot.slane %v2014_v10, 2  ;;  %v2721_v35 = vrot.slane %v2720_v9, 5 }
  0x70   :  { %2718 = vst [vmem:[#allocation14_spill] sm:$0xff] %v2026_v43  ;;  %2719 = vst [vmem:[#allocation15_spill] sm:$0xff] %v2030_v7  ;;  %v591_v63 = vadd.f32 %v542_v41, %v435_v45  ;;  %v2723_v40 = vrot.slane %v2722_v59, 6  ;;  %v2562_v53 = vrot.slane %v2018_v14, 3  ;;  %v2561_v50 = vrot.slane %v2022_v4, 4  ;;  %v2049_v41 = vld [vmem:[%s2444_s1 + $0x88] sm:$0xff] }
  0x71   :  { %v854_v22 = vsel %vm827_vm4, %v2721_v35, %v2565_v5  ;;  %1078 = vst [vmem:[%s2445_s3 + $0x48] sm:$0xff] %v1058_v25  ;;  %v2724_v59 = vrot.slane %v1653_v49, 1  ;;  %v2725_v45 = vrot.slane %v1664_v27, 2  ;;  %v2566_v35 = vrot.slane %v2026_v43, 5 }
  0x72   :  { %v1010_v44 = vsel %vm983_vm5, %v2723_v40, %v2560_v47  ;;  %v747_v46 = vadd.f32 %v698_v37, %v591_v63  ;;  %v2726_v25 = vrot.slane %v1672_v18, 3  ;;  %v106_v49 = vmul.f32 %v1317_v2, %v1695_v3 }
  0x73   :  { %v232_v40 = vsel %vm203_vm0, %v2724_v59, %v2564_v12  ;;  %v388_v9 = vsel %vm359_vm1, %v2725_v45, %v2563_v13  ;;  %v2727_v27 = vrot.slane %v1676_v32, 4  ;;  %v2084_v18 = vmul.f32 %v1345_v51, %v2049_v41  ;;  %v2730_v32 = vld [vmem:[#allocation17_spill] sm:$0xff] }
  0x74   :  { %v280_v47 = vadd.f32 %v232_v40, %v105_v8  ;;  %v544_v37 = vsel %vm515_vm2, %v2726_v25, %v2562_v53  ;;  %v903_v59 = vadd.f32 %v854_v22, %v747_v46  ;;  %v2080_v8 = vmul.f32 %v1331_v26, %v2049_v41  ;;  %v2732_v53 = vld [vmem:[#allocation18_spill] sm:$0xff]  ;;  %v2733_v13 = vld [vmem:[#allocation45_spill] sm:$0xff] }
  0x75   :  { %v700_v45 = vsel %vm671_vm3, %v2727_v27, %v2561_v50  ;;  %2729 = vst [vmem:[#allocation21_spill] sm:$0xff] %v2084_v18  ;;  %v2088_v25 = vmul.f32 %v1348_v55, %v2049_v41  ;;  %v2092_v3 = vmul.f32 %v1355_v28, %v2049_v41  ;;  %v2096_v22 = vmul.f32 %v2730_v32, %v2049_v41 }
  0x76   :  { %2728 = vst [vmem:[#allocation16_spill] sm:$0xff] %v2080_v8  ;;  %v436_v40 = vadd.f32 %v388_v9, %v280_v47  ;;  %v1059_v46 = vadd.f32 %v1010_v44, %v903_v59  ;;  %v2570_v27 = vrot.slane %v2080_v8, 1  ;;  %v2572_v50 = vrot.slane %v2084_v18, 2  ;;  %v2114_v44 = vld [vmem:[%s2444_s1 + $0x90] sm:$0xff]  ;;  %v2736_v59 = vld [vmem:[#allocation46_spill] sm:$0xff] }
  0x77   :  { %2731 = vst [vmem:[#allocation22_spill] sm:$0xff] %v2096_v22  ;;  %v2102_v47 = vmul.f32 %v2732_v53, %v2049_v41  ;;  %v2734_v12 = vrot.slane %v2733_v13, 5  ;;  %v2740_v63 = vrot.slane %v1734_v24, 2  ;;  %v2745_v24 = vld [vmem:[#allocation49_spill] sm:$0xff] }
  0x78   :  { %v592_v9 = vadd.f32 %v544_v37, %v436_v40  ;;  %1079 = vst [vmem:[%s2445_s3 + $0x50] sm:$0xff] %v1059_v46  ;;  %v2735_v37 = vrot.slane %v2030_v7, 6  ;;  %v2737_v40 = vrot.slane %v2736_v59, 6  ;;  %v2746_v18 = vrot.slane %v2745_v24, 4  ;;  %v2751_v24 = vld [vmem:[#allocation30_spill] sm:$0xff] }
  0x79   :  { %v856_v5 = vsel %vm827_vm4, %v2734_v12, %v2566_v35  ;;  %v2738_v12 = vld [vmem:[#allocation47_spill] sm:$0xff]  ;;  %v390_v43 = vsel %vm359_vm1, %v2740_v63, %v2572_v50  ;;  %v2168_v46 = vmul.f32 %v2751_v24, %v2114_v44 }
  0x7a   :  { %v1012_v13 = vsel %vm983_vm5, %v2737_v40, %v2735_v37  ;;  %v2739_v35 = vrot.slane %v2738_v12, 1  ;;  %v748_v53 = vadd.f32 %v700_v45, %v592_v9  ;;  %v107_v37 = vmul.f32 %v1402_v29, %v1769_v1  ;;  %v2742_v12 = vld [vmem:[#allocation48_spill] sm:$0xff] }
  0x7b   :  { %v2741_v40 = vrot.slane %v2088_v25, 3  ;;  %v2743_v8 = vrot.slane %v2742_v12, 3  ;;  %v2747_v45 = vld [vmem:[#allocation20_spill] sm:$0xff]  ;;  %v2749_v12 = vld [vmem:[#allocation25_spill] sm:$0xff] }
  0x7c   :  { %v234_v32 = vsel %vm203_vm0, %v2739_v35, %v2570_v27  ;;  %v2744_v27 = vrot.slane %v2092_v3, 4  ;;  %v904_v1 = vadd.f32 %v856_v5, %v748_v53  ;;  %v2158_v59 = vmul.f32 %v2749_v12, %v2114_v44 }
  0x7d   :  { %v281_v7 = vadd.f32 %v234_v32, %v106_v49  ;;  %v546_v35 = vsel %vm515_vm2, %v2743_v8, %v2741_v40  ;;  %v2150_v49 = vmul.f32 %v2747_v45, %v2114_v44  ;;  %v2748_v32 = vld [vmem:[#allocation24_spill] sm:$0xff]  ;;  %v2750_v8 = vld [vmem:[#allocation26_spill] sm:$0xff] }
  0x7e   :  { %v702_v63 = vsel %vm671_vm3, %v2746_v18, %v2744_v27  ;;  %v2154_v9 = vmul.f32 %v2748_v32, %v2114_v44  ;;  %v2162_v40 = vmul.f32 %v2750_v8, %v2114_v44  ;;  %v2752_v32 = vld [vmem:[#allocation31_spill] sm:$0xff]  ;;  %v1060_v5 = vadd.f32 %v1012_v13, %v904_v1  ;;  %v2179_v18 = vld [vmem:[%s2444_s1 + $0x98] sm:$0xff]  ;;  %v2755_v8 = vld [vmem:[#allocation50_spill] sm:$0xff] }
  0x7f   :  { %v437_v50 = vadd.f32 %v390_v43, %v281_v7  ;;  %v2172_v53 = vmul.f32 %v2752_v32, %v2114_v44  ;;  %v2754_v27 = vrot.slane %v2096_v22, 5  ;;  %v2756_v24 = vrot.slane %v2755_v8, 5  ;;  %v2760_v1 = vld [vmem:[#allocation11_spill] sm:$0xff] }
  0x80   :  { %v2757_v32 = vrot.slane %v2102_v47, 6  ;;  %v2758_v13 = vrot.slane %v1752_v61, 6  ;;  %v2761_v12 = vrot.slane %v2760_v1, 1  ;;  %v2762_v29 = vrot.slane %v2154_v9, 2  ;;  %1080 = vst [vmem:[%s2445_s3 + $0x58] sm:$0xff] %v1060_v5  ;;  %v2771_v1 = vld [vmem:[#allocation37_spill] sm:$0xff] }
  0x81   :  { %2753 = vst [vmem:[#allocation23_spill] sm:$0xff] %v2172_v53  ;;  %v593_v43 = vadd.f32 %v546_v35, %v437_v50  ;;  %v858_v45 = vsel %vm827_vm4, %v2756_v24, %v2754_v27  ;;  %v2759_v35 = vrot.slane %v2150_v49, 1  ;;  %v2763_v22 = vrot.slane %v1804_v33, 2 }
  0x82   :  { %v1014_v50 = vsel %vm983_vm5, %v2758_v13, %v2757_v32  ;;  %v2764_v13 = vrot.slane %v2158_v59, 3  ;;  %v2766_v33 = vrot.slane %v2162_v40, 4 }
  0x83   :  { %v236_v7 = vsel %vm203_vm0, %v2761_v12, %v2759_v35  ;;  %v392_v8 = vsel %vm359_vm1, %v2763_v22, %v2762_v29  ;;  %v749_v27 = vadd.f32 %v702_v63, %v593_v43  ;;  %v2765_v12 = vrot.slane %v1808_v56, 3 }
  0x84   :  { %v282_v61 = vadd.f32 %v236_v7, %v107_v37  ;;  %v2767_v29 = vrot.slane %v1812_v48, 4  ;;  %v108_v63 = vmul.f32 %v1484_v42, %v1834_v11  ;;  %v2220_v37 = vmul.f32 %v2685_v17, %v2179_v18  ;;  %v2769_v7 = vld [vmem:[#allocation36_spill] sm:$0xff]  ;;  %v2775_v11 = vld [vmem:[#allocation39_spill] sm:$0xff] }
  0x85   :  { %v548_v35 = vsel %vm515_vm2, %v2765_v12, %v2764_v13  ;;  %v905_v5 = vadd.f32 %v858_v45, %v749_v27  ;;  %v2224_v56 = vmul.f32 %v2769_v7, %v2179_v18  ;;  %v2228_v13 = vmul.f32 %v2771_v1, %v2179_v18  ;;  %v2773_v12 = vld [vmem:[#allocation38_spill] sm:$0xff]  ;;  %v2776_v45 = vld [vmem:[#allocation41_spill] sm:$0xff] }
  0x86   :  { %v704_v22 = vsel %vm671_vm3, %v2767_v29, %v2766_v33  ;;  %2768 = vst [vmem:[#allocation27_spill] sm:$0xff] %v2220_v37  ;;  %v438_v43 = vadd.f32 %v392_v8, %v282_v61  ;;  %v2233_v33 = vmul.f32 %v2773_v12, %v2179_v18  ;;  %v2237_v29 = vmul.f32 %v2775_v11, %v2179_v18  ;;  %v2778_v1 = vld [vmem:[#allocation13_spill] sm:$0xff] }
  0x87   :  { %2770 = vst [vmem:[#allocation28_spill] sm:$0xff] %v2224_v56  ;;  %2772 = vst [vmem:[#allocation29_spill] sm:$0xff] %v2228_v13  ;;  %v2241_v8 = vmul.f32 %v2776_v45, %v2179_v18  ;;  %v1061_v27 = vadd.f32 %v1014_v50, %v905_v5  ;;  %v2577_v24 = vrot.slane %v2224_v56, 2  ;;  %v2579_v32 = vrot.slane %v2228_v13, 3 }
  0x88   :  { %2774 = vst [vmem:[#allocation33_spill] sm:$0xff] %v2233_v33  ;;  %v594_v61 = vadd.f32 %v548_v35, %v438_v43  ;;  %v2777_v48 = vrot.slane %v2168_v46, 5  ;;  %v2779_v42 = vrot.slane %v2778_v1, 5  ;;  %v2780_v7 = vrot.slane %v2172_v53, 6 }
  0x89   :  { %v2781_v11 = vrot.slane %v1821_v23, 6  ;;  %v2782_v45 = vrot.slane %v2220_v37, 1  ;;  %v2783_v50 = vrot.slane %v1870_v16, 1  ;;  %v2583_v5 = vrot.slane %v2233_v33, 4  ;;  %1081 = vst [vmem:[%s2445_s3 + $0x60] sm:$0xff] %v1061_v27  ;;  %v2793_v33 = vld [vmem:[#allocation7_spill] sm:$0xff] }
  0x8a   :  { %v860_v12 = vsel %vm827_vm4, %v2779_v42, %v2777_v48  ;;  %v750_v43 = vadd.f32 %v704_v22, %v594_v61  ;;  %v2784_v23 = vrot.slane %v1874_v30, 2  ;;  %v2785_v16 = vrot.slane %v1878_v39, 3  ;;  %v2788_v30 = vld [vmem:[#allocation2_spill] sm:$0xff]  ;;  %v2791_v39 = vld [vmem:[#allocation5_spill] sm:$0xff] }
  0x8b   :  { %v1016_v17 = vsel %vm983_vm5, %v2781_v11, %v2780_v7  ;;  %v238_v35 = vsel %vm203_vm0, %v2783_v50, %v2782_v45  ;;  %v2786_v11 = vld [vmem:[#allocation12_spill] sm:$0xff]  ;;  %v109_v27 = vmul.f32 %v2788_v30, %v1899_v38  ;;  %v485_v13 = vmul.f32 0.0, %v2791_v39 }
  0x8c   :  { %v283_v42 = vadd.f32 %v238_v35, %v108_v63  ;;  %v394_v7 = vsel %vm359_vm1, %v2784_v23, %v2577_v24  ;;  %v550_v48 = vsel %vm515_vm2, %v2785_v16, %v2579_v32  ;;  %v2787_v45 = vrot.slane %v2786_v11, 4  ;;  %v2789_v35 = vld [vmem:[#allocation3_spill] sm:$0xff]  ;;  %v2790_v24 = vld [vmem:[#allocation4_spill] sm:$0xff]  ;;  %v2792_v16 = vld [vmem:[#allocation6_spill] sm:$0xff] }
  0x8d   :  { %v906_v61 = vadd.f32 %v860_v12, %v750_v43  ;;  %v173_v23 = vmul.f32 0.0, %v2789_v35  ;;  %v329_v1 = vmul.f32 0.0, %v2790_v24  ;;  %v641_v32 = vmul.f32 0.0, %v2792_v16  ;;  %v2794_v11 = vld [vmem:[#allocation8_spill] sm:$0xff] }
  0x8e   :  { %v706_v22 = vsel %vm671_vm3, %v2787_v45, %v2583_v5  ;;  %v439_v50 = vadd.f32 %v394_v7, %v283_v42  ;;  %v797_v53 = vmul.f32 0.0, %v2793_v33  ;;  %v953_v56 = vmul.f32 0.0, %v2794_v11 }
  0x8f   :  { %v1062_v45 = vadd.f32 %v1016_v17, %v906_v61  ;;  %v239_v63 = vrot.slane %v173_v23, 1  ;;  %v395_v37 = vrot.slane %v329_v1, 2  ;;  %v2795_v38 = vrot.slane %v2237_v29, 5 }
  0x90   :  { %v595_v5 = vadd.f32 %v550_v48, %v439_v50  ;;  %v2796_v12 = vrot.slane %v1887_v36, 5  ;;  %v2797_v24 = vrot.slane %v2241_v8, 6  ;;  %v2798_v42 = vrot.slane %v1891_v15, 6 }
  0x91   :  { %v551_v30 = vrot.slane %v485_v13, 3  ;;  %v707_v33 = vrot.slane %v641_v32, 4  ;;  %1082 = vst [vmem:[%s2445_s3 + $0x68] sm:$0xff] %v1062_v45  ;;  %v2799_v1 = vrot.slane %v1940_v6, 1  ;;  %v2800_v36 = vrot.slane %v1944_v21, 2 }
  0x92   :  { %v862_v43 = vsel %vm827_vm4, %v2796_v12, %v2795_v38  ;;  %v1018_v7 = vsel %vm983_vm5, %v2798_v42, %v2797_v24  ;;  %v751_v17 = vadd.f32 %v706_v22, %v595_v5  ;;  %v863_v50 = vrot.slane %v797_v53, 5 }
  0x93   :  { %v240_v48 = vsel %vm203_vm0, %v2799_v1, %v239_v63  ;;  %v396_v61 = vsel %vm359_vm1, %v2800_v36, %v395_v37  ;;  %v2801_v15 = vrot.slane %v1948_v19, 3  ;;  %v1019_v32 = vrot.slane %v953_v56, 6  ;;  %v2803_v63 = vld [vmem:[#allocation9_spill] sm:$0xff] }
  0x94   :  { %v284_v35 = vadd.f32 %v240_v48, %v109_v27  ;;  %v110_v23 = vmul.f32 %v1177_v20, %v1984_v0  ;;  %v907_v39 = vadd.f32 %v862_v43, %v751_v17  ;;  %v2802_v5 = vrot.slane %v1953_v34, 4  ;;  %v2804_v20 = vld [vmem:[#allocation10_spill] sm:$0xff] }
  0x95   :  { %v552_v13 = vsel %vm515_vm2, %v2801_v15, %v551_v30  ;;  %v174_v22 = vmul.f32 0.0, %v1238_v54  ;;  %v330_v21 = vmul.f32 0.0, %v1246_v57  ;;  %v486_v53 = vmul.f32 0.0, %v1250_v58 }
  0x96   :  { %v708_v6 = vsel %vm671_vm3, %v2802_v5, %v707_v33  ;;  %v440_v37 = vadd.f32 %v396_v61, %v284_v35  ;;  %v642_v19 = vmul.f32 0.0, %v1259_v62  ;;  %v798_v27 = vmul.f32 0.0, %v2803_v63  ;;  %v2819_v63 = vld [vmem:[#allocation21_spill] sm:$0xff] }
  0x97   :  { %v1063_v56 = vadd.f32 %v1018_v7, %v907_v39  ;;  %v241_v16 = vrot.slane %v174_v22, 1  ;;  %v397_v11 = vrot.slane %v330_v21, 2  ;;  %v954_v0 = vmul.f32 0.0, %v2804_v20  ;;  %v2813_v22 = vld [vmem:[#allocation14_spill] sm:$0xff]  ;;  %v2815_v21 = vld [vmem:[#allocation15_spill] sm:$0xff] }
  0x98   :  { %v596_v45 = vadd.f32 %v552_v13, %v440_v37  ;;  %v2805_v34 = vrot.slane %v1957_v31, 5  ;;  %v553_v54 = vrot.slane %v486_v53, 3  ;;  %v709_v12 = vrot.slane %v642_v19, 4  ;;  %v2817_v53 = vld [vmem:[#allocation16_spill] sm:$0xff] }
  0x99   :  { %1083 = vst [vmem:[%s2445_s3 + $0x70] sm:$0xff] %v1063_v56  ;;  %v2806_v57 = vrot.slane %v1961_v60, 6  ;;  %v2807_v62 = vrot.slane %v2010_v52, 1  ;;  %v2808_v24 = vrot.slane %v2014_v10, 2  ;;  %v865_v42 = vrot.slane %v798_v27, 5 }
  0x9a   :  { %v864_v38 = vsel %vm827_vm4, %v2805_v34, %v863_v50  ;;  %v752_v7 = vadd.f32 %v708_v6, %v596_v45  ;;  %v1021_v33 = vrot.slane %v954_v0, 6  ;;  %v111_v17 = vmul.f32 %v1317_v2, %v2049_v41  ;;  %v2811_v41 = vld [vmem:[#allocation17_spill] sm:$0xff] }
  0x9b   :  { %v1020_v58 = vsel %vm983_vm5, %v2806_v57, %v1019_v32  ;;  %v242_v43 = vsel %vm203_vm0, %v2807_v62, %v241_v16  ;;  %v398_v31 = vsel %vm359_vm1, %v2808_v24, %v397_v11  ;;  %v2809_v1 = vrot.slane %v2018_v14, 3  ;;  %v2812_v32 = vld [vmem:[#allocation18_spill] sm:$0xff] }
  0x9c   :  { %v285_v30 = vadd.f32 %v242_v43, %v110_v23  ;;  %v2810_v48 = vrot.slane %v2022_v4, 4  ;;  %v175_v36 = vmul.f32 0.0, %v1331_v26  ;;  %v331_v10 = vmul.f32 0.0, %v1345_v51 }
  0x9d   :  { %v554_v60 = vsel %vm515_vm2, %v2809_v1, %v553_v54  ;;  %v908_v61 = vadd.f32 %v864_v38, %v752_v7  ;;  %v487_v35 = vmul.f32 0.0, %v1348_v55  ;;  %v643_v15 = vmul.f32 0.0, %v1355_v28  ;;  %v2826_v7 = vld [vmem:[#allocation25_spill] sm:$0xff]  ;;  %v2828_v1 = vld [vmem:[#allocation30_spill] sm:$0xff] }
  0x9e   :  { %v710_v52 = vsel %vm671_vm3, %v2810_v48, %v709_v12  ;;  %v441_v50 = vadd.f32 %v398_v31, %v285_v30  ;;  %v243_v13 = vrot.slane %v175_v36, 1  ;;  %v399_v2 = vrot.slane %v331_v10, 2  ;;  %v2823_v12 = vld [vmem:[#allocation19_spill] sm:$0xff]  ;;  %v2825_v31 = vld [vmem:[#allocation24_spill] sm:$0xff] }
  0x9f   :  { %v799_v14 = vmul.f32 0.0, %v2811_v41  ;;  %v955_v23 = vmul.f32 0.0, %v2812_v32  ;;  %v1064_v39 = vadd.f32 %v1020_v58, %v908_v61  ;;  %v555_v5 = vrot.slane %v487_v35, 3  ;;  %v2824_v58 = vld [vmem:[#allocation20_spill] sm:$0xff]  ;;  %v2829_v48 = vld [vmem:[#allocation31_spill] sm:$0xff] }
  0xa0   :  { %v597_v4 = vadd.f32 %v554_v60, %v441_v50  ;;  %v711_v6 = vrot.slane %v643_v15, 4  ;;  %v2814_v26 = vrot.slane %v2813_v22, 5  ;;  %v2816_v37 = vrot.slane %v2815_v21, 6 }
  0xa1   :  { %v2818_v28 = vrot.slane %v2817_v53, 1  ;;  %v2820_v27 = vrot.slane %v2819_v63, 2  ;;  %1084 = vst [vmem:[%s2445_s3 + $0x78] sm:$0xff] %v1064_v39  ;;  %v867_v20 = vrot.slane %v799_v14, 5  ;;  %v1023_v0 = vrot.slane %v955_v23, 6  ;;  %v2838_v53 = vld [vmem:[#allocation36_spill] sm:$0xff] }
  0xa2   :  { %v866_v51 = vsel %vm827_vm4, %v2814_v26, %v865_v42  ;;  %v1022_v55 = vsel %vm983_vm5, %v2816_v37, %v1021_v33  ;;  %v753_v16 = vadd.f32 %v710_v52, %v597_v4  ;;  %v2821_v45 = vrot.slane %v2088_v25, 3  ;;  %v2840_v63 = vld [vmem:[#allocation37_spill] sm:$0xff] }
  0xa3   :  { %v244_v19 = vsel %vm203_vm0, %v2818_v28, %v243_v13  ;;  %v400_v56 = vsel %vm359_vm1, %v2820_v27, %v399_v2  ;;  %v2822_v38 = vrot.slane %v2092_v3, 4  ;;  %v112_v57 = vmul.f32 %v2823_v12, %v2114_v44  ;;  %v2830_v44 = vld [vmem:[#allocation22_spill] sm:$0xff]  ;;  %v2844_v12 = vld [vmem:[#allocation41_spill] sm:$0xff] }
  0xa4   :  { %v286_v11 = vadd.f32 %v244_v19, %v111_v17  ;;  %v556_v34 = vsel %vm515_vm2, %v2821_v45, %v555_v5  ;;  %v176_v62 = vmul.f32 0.0, %v2824_v58  ;;  %v909_v43 = vadd.f32 %v866_v51, %v753_v16  ;;  %v2827_v17 = vld [vmem:[#allocation26_spill] sm:$0xff]  ;;  %v2842_v16 = vld [vmem:[#allocation39_spill] sm:$0xff] }
  0xa5   :  { %v712_v54 = vsel %vm671_vm3, %v2822_v38, %v711_v6  ;;  %v332_v42 = vmul.f32 0.0, %v2825_v31  ;;  %v488_v30 = vmul.f32 0.0, %v2826_v7  ;;  %v644_v25 = vmul.f32 0.0, %v2827_v17  ;;  %v2845_v58 = vld [vmem:[#allocation27_spill] sm:$0xff] }
  0xa6   :  { %v442_v24 = vadd.f32 %v400_v56, %v286_v11  ;;  %v245_v33 = vrot.slane %v176_v62, 1  ;;  %v800_v60 = vmul.f32 0.0, %v2828_v1  ;;  %v956_v3 = vmul.f32 0.0, %v2829_v48  ;;  %v2851_v1 = vld [vmem:[#allocation29_spill] sm:$0xff] }
  0xa7   :  { %v1065_v52 = vadd.f32 %v1022_v55, %v909_v43  ;;  %v401_v10 = vrot.slane %v332_v42, 2  ;;  %v557_v61 = vrot.slane %v488_v30, 3  ;;  %v2831_v50 = vrot.slane %v2830_v44, 5 }
  0xa8   :  { %v598_v36 = vadd.f32 %v556_v34, %v442_v24  ;;  %v2832_v15 = vrot.slane %v2150_v49, 1  ;;  %v713_v2 = vrot.slane %v644_v25, 4  ;;  %v2833_v14 = vrot.slane %v2102_v47, 6  ;;  %v2837_v47 = vld [vmem:[#allocation35_spill] sm:$0xff]  ;;  %v2847_v24 = vld [vmem:[#allocation28_spill] sm:$0xff] }
  0xa9   :  { %v868_v35 = vsel %vm827_vm4, %v2831_v50, %v867_v20  ;;  %1085 = vst [vmem:[%s2445_s3 + $0x80] sm:$0xff] %v1065_v52  ;;  %v2834_v39 = vrot.slane %v2154_v9, 2  ;;  %v2835_v5 = vrot.slane %v2158_v59, 3  ;;  %v2836_v6 = vrot.slane %v2162_v40, 4  ;;  %v2839_v9 = vld [vmem:[#allocation32_spill] sm:$0xff]  ;;  %v2841_v59 = vld [vmem:[#allocation38_spill] sm:$0xff] }
  0xaa   :  { %v246_v13 = vsel %vm203_vm0, %v2832_v15, %v245_v33  ;;  %v754_v41 = vadd.f32 %v712_v54, %v598_v36  ;;  %v1024_v32 = vsel %vm983_vm5, %v2833_v14, %v1023_v0  ;;  %v869_v26 = vrot.slane %v800_v60, 5 }
  0xab   :  { %v287_v23 = vadd.f32 %v246_v13, %v112_v57  ;;  %v402_v4 = vsel %vm359_vm1, %v2834_v39, %v401_v10  ;;  %v558_v49 = vsel %vm515_vm2, %v2835_v5, %v557_v61  ;;  %v714_v22 = vsel %vm671_vm3, %v2836_v6, %v713_v2  ;;  %v2853_v10 = vld [vmem:[#allocation33_spill] sm:$0xff] }
  0xac   :  { %v1025_v51 = vrot.slane %v956_v3, 6  ;;  %v910_v21 = vadd.f32 %v868_v35, %v754_v41  ;;  %v177_v55 = vmul.f32 0.0, %v2837_v47  ;;  %v333_v28 = vmul.f32 0.0, %v2838_v53 }
  0xad   :  { %v443_v37 = vadd.f32 %v402_v4, %v287_v23  ;;  %v113_v19 = vmul.f32 %v2839_v9, %v2179_v18  ;;  %v489_v27 = vmul.f32 0.0, %v2840_v63  ;;  %v645_v56 = vmul.f32 0.0, %v2841_v59 }
  0xae   :  { %v801_v11 = vmul.f32 0.0, %v2842_v16  ;;  %v1066_v40 = vadd.f32 %v1024_v32, %v910_v21  ;;  %v247_v0 = vrot.slane %v177_v55, 1  ;;  %v403_v45 = vrot.slane %v333_v28, 2 }
  0xaf   :  { %v599_v20 = vadd.f32 %v558_v49, %v443_v37  ;;  %v2843_v34 = vrot.slane %v2168_v46, 5  ;;  %v559_v54 = vrot.slane %v489_v27, 3  ;;  %v957_v57 = vmul.f32 0.0, %v2844_v12  ;;  %v2849_v46 = vld [vmem:[#allocation23_spill] sm:$0xff] }
  0xb0   :  { %1086 = vst [vmem:[%s2445_s3 + $0x88] sm:$0xff] %v1066_v40  ;;  %v2846_v62 = vrot.slane %v2845_v58, 1  ;;  %v2848_v31 = vrot.slane %v2847_v24, 2  ;;  %v715_v7 = vrot.slane %v645_v56, 4  ;;  %v2850_v30 = vrot.slane %v2849_v46, 6 }
  0xb1   :  { %v870_v38 = vsel %vm827_vm4, %v2843_v34, %v869_v26  ;;  %v755_v18 = vadd.f32 %v714_v22, %v599_v20  ;;  %v2852_v60 = vrot.slane %v2851_v1, 3  ;;  %v871_v3 = vrot.slane %v801_v11, 5 }
  0xb2   :  { %v248_v43 = vsel %vm203_vm0, %v2846_v62, %v247_v0  ;;  %v404_v42 = vsel %vm359_vm1, %v2848_v31, %v403_v45  ;;  %v1026_v33 = vsel %vm983_vm5, %v2850_v30, %v1025_v51  ;;  %v2854_v61 = vrot.slane %v2853_v10, 4 }
  0xb3   :  { %v288_v17 = vadd.f32 %v248_v43, %v113_v19  ;;  %v911_v25 = vadd.f32 %v870_v38, %v755_v18  ;;  %v560_v48 = vsel %vm515_vm2, %v2852_v60, %v559_v54  ;;  %v1027_v50 = vrot.slane %v957_v57, 6 }
  0xb4   :  { %v716_v44 = vsel %vm671_vm3, %v2854_v61, %v715_v7  ;;  %v2855_v15 = vrot.slane %v2237_v29, 5  ;;  %v2856_v41 = vrot.slane %v2241_v8, 6 }
  0xb5   :  { %v444_v52 = vadd.f32 %v404_v42, %v288_v17  ;;  %v1067_v36 = vadd.f32 %v1026_v33, %v911_v25 }
  0xb6   :  { %v872_v13 = vsel %vm827_vm4, %v2855_v15, %v871_v3  ;;  %v1028_v14 = vsel %vm983_vm5, %v2856_v41, %v1027_v50 }
  0xb7   :  { %v600_v35 = vadd.f32 %v560_v48, %v444_v52  ;;  %1087 = vst [vmem:[%s2445_s3 + $0x90] sm:$0xff] %v1067_v36 }
  0xb9   :  { %v756_v2 = vadd.f32 %v716_v44, %v600_v35 }
  0xbb   :  { %v912_v32 = vadd.f32 %v872_v13, %v756_v2 }
  0xbd   :  { %v1068_v23 = vadd.f32 %v1028_v14, %v912_v32 }
  0xbf   :  { %1088 = vst [vmem:[%s2445_s3 + $0x98] sm:$0xff] %v1068_v23 }

</bundles_post_ra>
